<compile_context>
chip_gen: v7x
topology: tpu7x:2x2x1
jax: 0.10.0
libtpu: 0.0.40
codegen_flags: <defaults>
</compile_context>

<pallas_src>
import functools

import jax
import jax.numpy as jnp
import numpy as np
from jax.experimental import pallas as pl
from jax.experimental.pallas import tpu as pltpu


# ----------------------------- Pallas kernel ------------------------------- #
def decoder_kernel(s0_ref, enc_ref, gi_emb_ref, y_emb_ref,
                   wa_e_ref, ws_ref, wc_ref, wo_h_ref, v_ref, b_hn_ref,
                   y_ref, h_ref,
                   h_carry_ref, eproj_ref, enc_f32_ref):
    t = pl.program_id(0)
    T = pl.num_programs(0)
    B, L, C = enc_ref.shape
    Hd = h_carry_ref.shape[1]
    H3 = 3 * Hd
    cdt = ws_ref.dtype                         # matmul-input dtype (bf16)

    # ---- step 0: seed recurrent state, cache step-invariant quantities -------
    @pl.when(t == 0)
    def _init():
        h_carry_ref[...] = s0_ref[...]
        enc_f32_ref[...] = enc_ref[...].astype(jnp.float32)
        eproj_ref[...] = jnp.dot(
            enc_ref[...].reshape(B * L, C), wa_e_ref[...],
            preferred_element_type=jnp.float32).reshape(B, L, Hd)

    s = h_carry_ref[...]                       # [B, Hd] f32 (recurrent carry)
    s_c = s.astype(cdt)

    # ---- single merged s-matmul: s @ [wa_s | W_hh^T] -> attn proj + GRU gh ---
    sm = jnp.dot(s_c, ws_ref[...], preferred_element_type=jnp.float32)  # [B, 4Hd]
    s_proj = sm[:, :Hd]                        # [B, Hd]
    gh = sm[:, Hd:]                            # [B, 3Hd] (hidden bias folded/split)

    # ---- Bahdanau attention: a = softmax_L( v . tanh(enc W_e + s W_s) ) ------
    energy = jnp.tanh(eproj_ref[...] + s_proj[:, None, :])              # [B, L, Hd] f32
    v = v_ref[...]                                                      # [1, Hd] f32
    scores = jnp.sum(energy * v[:, None, :], axis=-1)                   # [B, L]
    m = jnp.max(scores, axis=1, keepdims=True)
    p = jnp.exp(scores - m)
    a = p * pl.reciprocal(jnp.sum(p, axis=1, keepdims=True), approx=True)

    # ---- context: c = bmm(a, enc) --------------------------------------------
    c = jnp.sum(a[:, :, None] * enc_f32_ref[...], axis=1)               # [B, C] f32
    c_c = c.astype(cdt)

    # ---- single merged c-matmul: c @ [W_ih_ctx | W_fc_ctx] -------------------
    cm = jnp.dot(c_c, wc_ref[...], preferred_element_type=jnp.float32)  # [B, 3Hd+O_pad]
    gi_c = cm[:, :H3]
    y_c = cm[:, H3:]

    # ---- GRU step (PyTorch gate order r, z, n); elementwise in f32 -----------
    gi = gi_emb_ref[t] + gi_c                  # emb contribution + b_ih + b_hh[rz]
    r = jax.nn.sigmoid(gi[:, :Hd] + gh[:, :Hd])
    z = jax.nn.sigmoid(gi[:, Hd:2 * Hd] + gh[:, Hd:2 * Hd])
    n = jnp.tanh(gi[:, 2 * Hd:] + r * (gh[:, 2 * Hd:] + b_hn_ref[...]))
    h = (1.0 - z) * n + z * s                  # [B, Hd] f32

    # ---- fc_out: only the h-projection remains on the tail -------------------
    y = (jnp.dot(h.astype(cdt), wo_h_ref[...], preferred_element_type=jnp.float32)
         + y_c + y_emb_ref[t])                 # [B, O_pad]; b_fc folded into y_emb

    h_carry_ref[...] = h                       # carry for next step
    y_ref[t] = y                               # resident [T,B,O_pad] block, lane-dense

    @pl.when(t == T - 1)
    def _finalize():
        h_ref[...] = h                         # resident output, written once


# ------------------- one-time parameter preparation (hoisted) --------------- #
def prepare_decoder_params(params, compute_dtype=jnp.bfloat16, lane=128):
    """Split / transpose / merge / pad / cast the PyTorch-layout weights once."""
    Hd = params["W_hh"].shape[1]
    E = params["emb_table"].shape[1]
    O = params["W_fc"].shape[0]
    C = params["W_attn"].shape[1] - Hd
    O_pad = ((O + lane - 1) // lane) * lane

    W_attn = params["W_attn"]                  # [Hd, Hd + C], cat order (s, enc)
    wa_s = W_attn[:, :Hd].T                    # [Hd, Hd]
    wa_e = W_attn[:, Hd:].T                    # [C, Hd]
    v = params["v"].reshape(1, Hd).astype(jnp.float32)

    W_ih = params["W_ih"]                      # [3Hd, E + C], GRU input = cat(emb, c)
    wi_e = W_ih[:, :E].T                       # [E, 3Hd]
    wi_c = W_ih[:, E:].T                       # [C, 3Hd]
    wh = params["W_hh"].T                      # [Hd, 3Hd]
    b_i = params["b_ih"].reshape(1, 3 * Hd).astype(jnp.float32)
    b_h = params["b_hh"].reshape(1, 3 * Hd).astype(jnp.float32)
    # Fold b_ih (all gates) + the r/z part of b_hh into the precomputed emb
    # contribution; only the n-part of b_hh stays in-kernel (it must sit inside
    # the r * (...) product of the GRU new-gate).
    b_gi = b_i + jnp.concatenate(
        [b_h[:, :2 * Hd], jnp.zeros((1, Hd), jnp.float32)], axis=1)
    b_hn = b_h[:, 2 * Hd:]                     # [1, Hd]

    W_fc = params["W_fc"]                      # [O, Hd + C + E], cat order (h, c, emb)
    wo_h = W_fc[:, :Hd].T                      # [Hd, O]
    wo_c = W_fc[:, Hd:Hd + C].T                # [C, O]
    wo_e = W_fc[:, Hd + C:].T                  # [E, O]
    b_o = params["b_fc"].reshape(1, O).astype(jnp.float32)
    if O_pad != O:                             # pad vocab dim to a lane multiple
        pad = ((0, 0), (0, O_pad - O))
        wo_h = jnp.pad(wo_h, pad)
        wo_c = jnp.pad(wo_c, pad)
        wo_e = jnp.pad(wo_e, pad)
        b_o = jnp.pad(b_o, pad)

    cast = lambda x: x.astype(compute_dtype)
    return {
        "emb_table": cast(params["emb_table"]),
        # in-kernel weights (merged RHSs cut MXU push count on the serial path)
        "wa_e": cast(wa_e),                               # [C, Hd]
        "ws": cast(jnp.concatenate([wa_s, wh], axis=1)),  # [Hd, 4Hd]  (s-dependent)
        "wc": cast(jnp.concatenate([wi_c, wo_c], axis=1)),  # [C, 3Hd+O_pad] (c-dependent)
        "wo_h": cast(wo_h),                               # [Hd, O_pad]
        "v": v, "b_hn": b_hn,
        # wrapper-side (token-only, hoisted out of the recurrence)
        "wi_e": cast(wi_e), "wo_e": cast(wo_e),
        "b_gi": b_gi, "b_o": b_o,
    }


# ----------------------------- forward wrapper ------------------------------ #
@functools.partial(jax.jit, static_argnames=("output_dim",))
def decoder_forward(tokens, s0, enc_output, prep, *, output_dim):
    """Run T decode steps in one kernel.

    tokens     : [T, B] int32 token ids (one per decode step)
    s0         : [B, Hd] f32 initial decoder hidden state
    enc_output : [L, B, C] encoder outputs (seq-major, like PyTorch), C = 2*enc_hid
    -> (y_all [T, B, O] f32, h_final [B, Hd] f32)
    """
    T, B = tokens.shape
    L = enc_output.shape[0]
    Hd = s0.shape[1]
    H3 = 3 * Hd
    cdt = prep["wa_e"].dtype

    # per-call glue: embedding gather (dropout = identity) + layout change
    emb_all = jnp.take(prep["emb_table"], tokens, axis=0)          # [T, B, E] bf16
    enc = jnp.transpose(enc_output, (1, 0, 2)).astype(cdt)         # [B, L, C] bf16

    E = emb_all.shape[-1]
    C = enc.shape[-1]
    O_pad = prep["wo_h"].shape[1]

    # token-only matmuls for ALL steps at once (single [T*B, E] MXU-friendly dots,
    # done by XLA outside the serial recurrence); biases folded in.
    emb2 = emb_all.reshape(T * B, E)
    gi_emb = (jnp.dot(emb2, prep["wi_e"], preferred_element_type=jnp.float32)
              + prep["b_gi"]).reshape(T, B, H3)                    # [T, B, 3Hd] f32
    y_emb = (jnp.dot(emb2, prep["wo_e"], preferred_element_type=jnp.float32)
             + prep["b_o"]).reshape(T, B, O_pad)                   # [T, B, O_pad] f32

    const2 = lambda t: (0, 0)
    const3 = lambda t: (0, 0, 0)
    grid_spec = pltpu.PrefetchScalarGridSpec(
        num_scalar_prefetch=0,
        grid=(T,),
        in_specs=[
            pl.BlockSpec((B, Hd), const2),                 # s0 (read at t == 0)
            pl.BlockSpec((B, L, C), const3),               # encoder outputs (resident)
            pl.BlockSpec((T, B, H3), const3),              # precomputed GRU emb terms
            pl.BlockSpec((T, B, O_pad), const3),           # precomputed fc_out emb terms
            pl.BlockSpec((C, Hd), const2),                 # wa_e   (resident)
            pl.BlockSpec((Hd, 4 * Hd), const2),            # merged s-weights
            pl.BlockSpec((C, H3 + O_pad), const2),         # merged c-weights
            pl.BlockSpec((Hd, O_pad), const2),             # wo_h
            pl.BlockSpec((1, Hd), const2),                 # v (f32)
            pl.BlockSpec((1, Hd), const2),                 # b_hh (n-gate part)
        ],
        out_specs=[
            pl.BlockSpec((T, B, O_pad), const3),           # all logits (resident block)
            pl.BlockSpec((B, Hd), const2),                 # final hidden
        ],
        scratch_shapes=[
            pltpu.VMEM((B, Hd), jnp.float32),              # recurrent carry
            pltpu.VMEM((B, L, Hd), jnp.float32),           # cached enc @ wa_e
            pltpu.VMEM((B, L, C), jnp.float32),            # cached f32 encoder outputs
        ],
    )

    y_pad, h = pl.pallas_call(
        decoder_kernel,
        grid_spec=grid_spec,
        out_shape=(jax.ShapeDtypeStruct((T, B, O_pad), jnp.float32),
                   jax.ShapeDtypeStruct((B, Hd), jnp.float32)),
        compiler_params=pltpu.CompilerParams(
            dimension_semantics=("arbitrary",)),   # recurrent over decode steps
    )(s0, enc, gi_emb, y_emb,
      prep["wa_e"], prep["ws"], prep["wc"], prep["wo_h"],
      prep["v"], prep["b_hn"])

    return y_pad[:, :, :output_dim], h


def decoder_step(dec_input, s, enc_output, prep, *, output_dim):
    """Single decode step — same signature/semantics as Decoder.forward."""
    y, h = decoder_forward(dec_input[None, :], s, enc_output, prep,
                           output_dim=output_dim)
    return y[0], h


# ----------------------------- reference (plain JAX, f32) ------------------- #
def decoder_reference(dec_input, s, enc_output, params):
    emb = params["emb_table"][dec_input]                      # [B, E]
    L = enc_output.shape[0]
    enc = jnp.transpose(enc_output, (1, 0, 2))                # [B, L, C]
    Hd = s.shape[1]

    s_rep = jnp.repeat(s[:, None, :], L, axis=1)              # [B, L, Hd]
    energy = jnp.tanh(jnp.einsum("blk,hk->blh",
                                 jnp.concatenate([s_rep, enc], axis=2),
                                 params["W_attn"], precision="highest"))
    scores = jnp.einsum("blh,h->bl", energy, params["v"], precision="highest")
    a = jax.nn.softmax(scores, axis=1)
    c = jnp.einsum("bl,blc->bc", a, enc, precision="highest")

    x = jnp.concatenate([emb, c], axis=1)
    gi = jnp.einsum("bi,gi->bg", x, params["W_ih"], precision="highest") + params["b_ih"]
    gh = jnp.einsum("bh,gh->bg", s, params["W_hh"], precision="highest") + params["b_hh"]
    r = jax.nn.sigmoid(gi[:, 0:Hd] + gh[:, 0:Hd])
    z = jax.nn.sigmoid(gi[:, Hd:2 * Hd] + gh[:, Hd:2 * Hd])
    n = jnp.tanh(gi[:, 2 * Hd:] + r * gh[:, 2 * Hd:])
    h = (1.0 - z) * n + z * s

    feat = jnp.concatenate([h, c, emb], axis=1)
    y = jnp.einsum("bf,of->bo", feat, params["W_fc"], precision="highest") + params["b_fc"]
    return y, h


# ----------------------------- main ----------------------------------------- #
if __name__ == "__main__":
    # small but lane-friendly shapes
    B, L, T = 8, 8, 4           # batch, src_len, decode steps
    E = 32                      # emb_dim
    He = 64                     # enc_hid_dim  (C = 2*He = 128)
    C = 2 * He
    Hd = 128                    # dec_hid_dim
    O = 64                      # output_dim (vocab)

    key = jax.random.PRNGKey(0)
    ks = jax.random.split(key, 12)

    def init(k, shape, fan_in):
        return (jax.random.normal(k, shape, dtype=jnp.float32) / np.sqrt(fan_in)).astype(jnp.float32)

    params = {
        "emb_table": init(ks[0], (O, E), E),
        "W_attn":    init(ks[1], (Hd, Hd + C), Hd + C),     # attn Linear (no bias)
        "v":         init(ks[2], (Hd,), Hd),                # attn scoring vector
        "W_ih":      init(ks[3], (3 * Hd, E + C), E + C),   # GRU input weights (r,z,n)
        "W_hh":      init(ks[4], (3 * Hd, Hd), Hd),         # GRU hidden weights (r,z,n)
        "b_ih":      init(ks[5], (3 * Hd,), Hd),
        "b_hh":      init(ks[6], (3 * Hd,), Hd),
        "W_fc":      init(ks[7], (O, Hd + C + E), Hd + C + E),
        "b_fc":      init(ks[8], (O,), O),
    }

    tokens = jax.random.randint(ks[9], (T, B), 0, O, dtype=jnp.int32)      # [T, B]
    s0 = init(ks[10], (B, Hd), 1)                                          # [B, Hd]
    enc_output = init(ks[11], (L, B, C), 1)                                # [L, B, C]

    # one-time weight prep (split / transpose / merge / pad-to-128 / bf16 cast)
    prep = prepare_decoder_params(params)

    # ---- multi-step decode: one kernel launch for all T steps ----
    y_all, h_final = decoder_forward(tokens, s0, enc_output, prep, output_dim=O)
    jax.block_until_ready((y_all, h_final))

    # ---- single-step path (original Decoder.forward signature) ----
    y_step, h_step = decoder_step(tokens[0], s0, enc_output, prep, output_dim=O)
    jax.block_until_ready((y_step, h_step))

    # ---- pure-JAX f32 reference (per-step loop) ----
    y_refs, h_ref = [], s0
    for t in range(T):
        y_t, h_ref = decoder_reference(tokens[t], h_ref, enc_output, params)
        y_refs.append(y_t)
    y_ref = jnp.stack(y_refs, axis=0)

    assert y_all.shape == (T, B, O) and h_final.shape == (B, Hd)
    assert y_step.shape == (B, O) and h_step.shape == (B, Hd)

    # tolerances account for deliberate bf16 weight/activation storage vs f32 reference
    np.testing.assert_allclose(np.asarray(y_step), np.asarray(y_refs[0]), rtol=3e-2, atol=3e-2)
    np.testing.assert_allclose(np.asarray(y_all), np.asarray(y_ref), rtol=3e-2, atol=3e-2)
    np.testing.assert_allclose(np.asarray(h_final), np.asarray(h_ref), rtol=3e-2, atol=3e-2)

    print("KERNEL_OK")
</pallas_src>

<mosaic_0001>
module attributes {stable_mosaic.version = 11 : i64} {
  func.func @decoder_kernel(%arg0: i32, %arg1: memref<8x128xf32, #tpu.memory_space<vmem>>, %arg2: memref<8x8x128xbf16, #tpu.memory_space<vmem>>, %arg3: memref<4x8x384xf32, #tpu.memory_space<vmem>>, %arg4: memref<4x8x128xf32, #tpu.memory_space<vmem>>, %arg5: memref<128x128xbf16, #tpu.memory_space<vmem>>, %arg6: memref<128x512xbf16, #tpu.memory_space<vmem>>, %arg7: memref<128x512xbf16, #tpu.memory_space<vmem>>, %arg8: memref<128x128xbf16, #tpu.memory_space<vmem>>, %arg9: memref<1x128xf32, #tpu.memory_space<vmem>>, %arg10: memref<1x128xf32, #tpu.memory_space<vmem>>, %arg11: memref<4x8x128xf32, #tpu.memory_space<vmem>>, %arg12: memref<8x128xf32, #tpu.memory_space<vmem>>, %arg13: memref<8x128xf32, #tpu.memory_space<vmem>>, %arg14: memref<8x8x128xf32, #tpu.memory_space<vmem>>, %arg15: memref<8x8x128xf32, #tpu.memory_space<vmem>>) attributes {dimension_semantics = [#tpu.dimension_semantics<arbitrary>], iteration_bounds = array<i64: 4>, scalar_prefetch = 0 : i64, scratch_operands = 3 : i64, tpu.core_type = #tpu.core_type<tc>, window_params = [{pipeline_mode = #tpu.pipeline_mode<synchronous>, transform_indices = @transform_0, window_bounds = array<i64: 8, 128>}, {pipeline_mode = #tpu.pipeline_mode<synchronous>, transform_indices = @transform_1, window_bounds = array<i64: 8, 8, 128>}, {pipeline_mode = #tpu.pipeline_mode<synchronous>, transform_indices = @transform_2, window_bounds = array<i64: 4, 8, 384>}, {pipeline_mode = #tpu.pipeline_mode<synchronous>, transform_indices = @transform_3, window_bounds = array<i64: 4, 8, 128>}, {pipeline_mode = #tpu.pipeline_mode<synchronous>, transform_indices = @transform_4, window_bounds = array<i64: 128, 128>}, {pipeline_mode = #tpu.pipeline_mode<synchronous>, transform_indices = @transform_5, window_bounds = array<i64: 128, 512>}, {pipeline_mode = #tpu.pipeline_mode<synchronous>, transform_indices = @transform_6, window_bounds = array<i64: 128, 512>}, {pipeline_mode = #tpu.pipeline_mode<synchronous>, transform_indices = @transform_7, window_bounds = array<i64: 128, 128>}, {pipeline_mode = #tpu.pipeline_mode<synchronous>, transform_indices = @transform_8, window_bounds = array<i64: 1, 128>}, {pipeline_mode = #tpu.pipeline_mode<synchronous>, transform_indices = @transform_9, window_bounds = array<i64: 1, 128>}, {pipeline_mode = #tpu.pipeline_mode<synchronous>, transform_indices = @transform_10, window_bounds = array<i64: 4, 8, 128>}, {pipeline_mode = #tpu.pipeline_mode<synchronous>, transform_indices = @transform_11, window_bounds = array<i64: 8, 128>}]} {
    %c0_i32 = arith.constant 0 : i32
    %0 = arith.cmpi eq, %arg0, %c0_i32 : i32
    %1 = arith.extui %0 : i1 to i32
    %c0_i32_0 = arith.constant 0 : i32
    %2 = arith.cmpi ne, %1, %c0_i32_0 : i32
    scf.if %2 {
      %c0_36 = arith.constant 0 : index
      %c0_37 = arith.constant 0 : index
      %88 = vector.load %arg1[%c0_36, %c0_37] : memref<8x128xf32, #tpu.memory_space<vmem>>, vector<8x128xf32>
      %c0_38 = arith.constant 0 : index
      %c0_39 = arith.constant 0 : index
      %89 = vector.load %arg13[%c0_38, %c0_39] : memref<8x128xf32, #tpu.memory_space<vmem>>, vector<8x128xf32>
      tpu.vector_store %arg13[%c0_38, %c0_39], %88 {strides = array<i32>} : memref<8x128xf32, #tpu.memory_space<vmem>>, vector<8x128xf32>,
      %c0_40 = arith.constant 0 : index
      %c0_41 = arith.constant 0 : index
      %c0_42 = arith.constant 0 : index
      %90 = vector.load %arg2[%c0_40, %c0_41, %c0_42] : memref<8x8x128xbf16, #tpu.memory_space<vmem>>, vector<8x8x128xbf16>
      %91 = arith.extf %90 : vector<8x8x128xbf16> to vector<8x8x128xf32>
      %c0_43 = arith.constant 0 : index
      %c0_44 = arith.constant 0 : index
      %c0_45 = arith.constant 0 : index
      %92 = vector.load %arg15[%c0_43, %c0_44, %c0_45] : memref<8x8x128xf32, #tpu.memory_space<vmem>>, vector<8x8x128xf32>
      tpu.vector_store %arg15[%c0_43, %c0_44, %c0_45], %91 {strides = array<i32>} : memref<8x8x128xf32, #tpu.memory_space<vmem>>, vector<8x8x128xf32>,
      %c0_46 = arith.constant 0 : index
      %c0_47 = arith.constant 0 : index
      %c0_48 = arith.constant 0 : index
      %93 = vector.load %arg2[%c0_46, %c0_47, %c0_48] : memref<8x8x128xbf16, #tpu.memory_space<vmem>>, vector<8x8x128xbf16>
      %94 = vector.shape_cast %93 : vector<8x8x128xbf16> to vector<64x128xbf16>
      %c0_49 = arith.constant 0 : index
      %c0_50 = arith.constant 0 : index
      %95 = vector.load %arg5[%c0_49, %c0_50] : memref<128x128xbf16, #tpu.memory_space<vmem>>, vector<128x128xbf16>
      %cst_51 = arith.constant dense<0.000000e+00> : vector<64x128xf32>
      %96 = tpu.matmul %94, %95, %cst_51 {dimension_numbers = #tpu.dot_dimension_numbers<[1], [0], [0], [1], [0, 0, 1, 1], [], []>} : vector<64x128xbf16>, vector<128x128xbf16>, vector<64x128xf32> -> vector<64x128xf32>
      %97 = vector.shape_cast %96 : vector<64x128xf32> to vector<8x8x128xf32>
      %c0_52 = arith.constant 0 : index
      %c0_53 = arith.constant 0 : index
      %c0_54 = arith.constant 0 : index
      %98 = vector.load %arg14[%c0_52, %c0_53, %c0_54] : memref<8x8x128xf32, #tpu.memory_space<vmem>>, vector<8x8x128xf32>
      tpu.vector_store %arg14[%c0_52, %c0_53, %c0_54], %97 {strides = array<i32>} : memref<8x8x128xf32, #tpu.memory_space<vmem>>, vector<8x8x128xf32>,
    } else {
    }
    %c0 = arith.constant 0 : index
    %c0_1 = arith.constant 0 : index
    %3 = vector.load %arg13[%c0, %c0_1] : memref<8x128xf32, #tpu.memory_space<vmem>>, vector<8x128xf32>
    %4 = arith.truncf %3 : vector<8x128xf32> to vector<8x128xbf16>
    %c0_2 = arith.constant 0 : index
    %c0_3 = arith.constant 0 : index
    %5 = vector.load %arg6[%c0_2, %c0_3] : memref<128x512xbf16, #tpu.memory_space<vmem>>, vector<128x512xbf16>
    %cst = arith.constant dense<0.000000e+00> : vector<8x512xf32>
    %6 = tpu.matmul %4, %5, %cst {dimension_numbers = #tpu.dot_dimension_numbers<[1], [0], [0], [1], [0, 0, 1, 1], [], []>} : vector<8x128xbf16>, vector<128x512xbf16>, vector<8x512xf32> -> vector<8x512xf32>
    %7 = vector.extract_strided_slice %6 {offsets = [0, 0], sizes = [8, 128], strides = [1, 1]} : vector<8x512xf32> to vector<8x128xf32>
    %8 = vector.extract_strided_slice %6 {offsets = [0, 128], sizes = [8, 384], strides = [1, 1]} : vector<8x512xf32> to vector<8x384xf32>
    %c0_4 = arith.constant 0 : index
    %c0_5 = arith.constant 0 : index
    %c0_6 = arith.constant 0 : index
    %9 = vector.load %arg14[%c0_4, %c0_5, %c0_6] : memref<8x8x128xf32, #tpu.memory_space<vmem>>, vector<8x8x128xf32>
    %10 = vector.shape_cast %7 : vector<8x128xf32> to vector<8x1x128xf32>
    %11 = vector.broadcast %10 : vector<8x1x128xf32> to vector<8x8x128xf32>
    %12 = arith.addf %9, %11 : vector<8x8x128xf32>
    %13 = math.tanh %12 : vector<8x8x128xf32>
    %c0_7 = arith.constant 0 : index
    %c0_8 = arith.constant 0 : index
    %14 = vector.load %arg9[%c0_7, %c0_8] : memref<1x128xf32, #tpu.memory_space<vmem>>, vector<1x128xf32>
    %15 = vector.shape_cast %14 : vector<1x128xf32> to vector<1x1x128xf32>
    %16 = vector.broadcast %15 : vector<1x1x128xf32> to vector<8x8x128xf32>
    %17 = arith.mulf %13, %16 : vector<8x8x128xf32>
    %cst_9 = arith.constant dense<0.000000e+00> : vector<8x8xf32>
    %18 = vector.multi_reduction <add>, %17, %cst_9 [2] : vector<8x8x128xf32> to vector<8x8xf32>
    %cst_10 = arith.constant dense<0xFF800000> : vector<8xf32>
    %19 = vector.multi_reduction <maximumf>, %18, %cst_10 [1] : vector<8x8xf32> to vector<8xf32>
    %20 = vector.shape_cast %19 : vector<8xf32> to vector<8x1xf32>
    %21 = vector.broadcast %20 : vector<8x1xf32> to vector<8x8xf32>
    %22 = arith.subf %18, %21 : vector<8x8xf32>
    %23 = math.exp %22 : vector<8x8xf32>
    %cst_11 = arith.constant dense<0.000000e+00> : vector<8xf32>
    %24 = vector.multi_reduction <add>, %23, %cst_11 [1] : vector<8x8xf32> to vector<8xf32>
    %25 = vector.shape_cast %24 : vector<8xf32> to vector<8x1xf32>
    %26 = tpu.reciprocal %25 {approx = true} : vector<8x1xf32> -> vector<8x1xf32>
    %27 = vector.broadcast %26 : vector<8x1xf32> to vector<8x8xf32>
    %28 = arith.mulf %23, %27 : vector<8x8xf32>
    %29 = vector.shape_cast %28 : vector<8x8xf32> to vector<8x8x1xf32>
    %c0_12 = arith.constant 0 : index
    %c0_13 = arith.constant 0 : index
    %c0_14 = arith.constant 0 : index
    %30 = vector.load %arg15[%c0_12, %c0_13, %c0_14] : memref<8x8x128xf32, #tpu.memory_space<vmem>>, vector<8x8x128xf32>
    %31 = vector.broadcast %29 : vector<8x8x1xf32> to vector<8x8x128xf32>
    %32 = arith.mulf %31, %30 : vector<8x8x128xf32>
    %cst_15 = arith.constant dense<0.000000e+00> : vector<8x128xf32>
    %33 = vector.multi_reduction <add>, %32, %cst_15 [1] : vector<8x8x128xf32> to vector<8x128xf32>
    %34 = arith.truncf %33 : vector<8x128xf32> to vector<8x128xbf16>
    %c0_16 = arith.constant 0 : index
    %c0_17 = arith.constant 0 : index
    %35 = vector.load %arg7[%c0_16, %c0_17] : memref<128x512xbf16, #tpu.memory_space<vmem>>, vector<128x512xbf16>
    %cst_18 = arith.constant dense<0.000000e+00> : vector<8x512xf32>
    %36 = tpu.matmul %34, %35, %cst_18 {dimension_numbers = #tpu.dot_dimension_numbers<[1], [0], [0], [1], [0, 0, 1, 1], [], []>} : vector<8x128xbf16>, vector<128x512xbf16>, vector<8x512xf32> -> vector<8x512xf32>
    %37 = vector.extract_strided_slice %36 {offsets = [0, 0], sizes = [8, 384], strides = [1, 1]} : vector<8x512xf32> to vector<8x384xf32>
    %38 = vector.extract_strided_slice %36 {offsets = [0, 384], sizes = [8, 128], strides = [1, 1]} : vector<8x512xf32> to vector<8x128xf32>
    %39 = arith.index_cast %arg0 : i32 to index
    %c0_19 = arith.constant 0 : index
    %c0_20 = arith.constant 0 : index
    %40 = vector.load %arg3[%39, %c0_19, %c0_20] : memref<4x8x384xf32, #tpu.memory_space<vmem>>, vector<1x8x384xf32>
    %41 = vector.shape_cast %40 : vector<1x8x384xf32> to vector<8x384xf32>
    %42 = arith.addf %41, %37 : vector<8x384xf32>
    %43 = vector.extract_strided_slice %42 {offsets = [0, 0], sizes = [8, 128], strides = [1, 1]} : vector<8x384xf32> to vector<8x128xf32>
    %44 = vector.extract_strided_slice %8 {offsets = [0, 0], sizes = [8, 128], strides = [1, 1]} : vector<8x384xf32> to vector<8x128xf32>
    %45 = arith.addf %43, %44 : vector<8x128xf32>
    %46 = arith.negf %45 : vector<8x128xf32>
    %47 = math.exp %46 : vector<8x128xf32>
    %cst_21 = arith.constant 1.000000e+00 : f32
    %48 = vector.broadcast %cst_21 : f32 to vector<8x128xf32>
    %49 = arith.addf %48, %47 : vector<8x128xf32>
    %50 = arith.divf %48, %49 : vector<8x128xf32>
    %51 = vector.extract_strided_slice %42 {offsets = [0, 128], sizes = [8, 128], strides = [1, 1]} : vector<8x384xf32> to vector<8x128xf32>
    %52 = vector.extract_strided_slice %8 {offsets = [0, 128], sizes = [8, 128], strides = [1, 1]} : vector<8x384xf32> to vector<8x128xf32>
    %53 = arith.addf %51, %52 : vector<8x128xf32>
    %54 = arith.negf %53 : vector<8x128xf32>
    %55 = math.exp %54 : vector<8x128xf32>
    %cst_22 = arith.constant 1.000000e+00 : f32
    %56 = vector.broadcast %cst_22 : f32 to vector<8x128xf32>
    %57 = arith.addf %56, %55 : vector<8x128xf32>
    %58 = arith.divf %56, %57 : vector<8x128xf32>
    %59 = vector.extract_strided_slice %42 {offsets = [0, 256], sizes = [8, 128], strides = [1, 1]} : vector<8x384xf32> to vector<8x128xf32>
    %60 = vector.extract_strided_slice %8 {offsets = [0, 256], sizes = [8, 128], strides = [1, 1]} : vector<8x384xf32> to vector<8x128xf32>
    %c0_23 = arith.constant 0 : index
    %c0_24 = arith.constant 0 : index
    %61 = vector.load %arg10[%c0_23, %c0_24] : memref<1x128xf32, #tpu.memory_space<vmem>>, vector<1x128xf32>
    %62 = vector.broadcast %61 : vector<1x128xf32> to vector<8x128xf32>
    %63 = arith.addf %60, %62 : vector<8x128xf32>
    %64 = arith.mulf %50, %63 : vector<8x128xf32>
    %65 = arith.addf %59, %64 : vector<8x128xf32>
    %66 = math.tanh %65 : vector<8x128xf32>
    %cst_25 = arith.constant 1.000000e+00 : f32
    %67 = vector.broadcast %cst_25 : f32 to vector<8x128xf32>
    %68 = arith.subf %67, %58 : vector<8x128xf32>
    %69 = arith.mulf %68, %66 : vector<8x128xf32>
    %70 = arith.mulf %58, %3 : vector<8x128xf32>
    %71 = arith.addf %69, %70 : vector<8x128xf32>
    %72 = arith.truncf %71 : vector<8x128xf32> to vector<8x128xbf16>
    %c0_26 = arith.constant 0 : index
    %c0_27 = arith.constant 0 : index
    %73 = vector.load %arg8[%c0_26, %c0_27] : memref<128x128xbf16, #tpu.memory_space<vmem>>, vector<128x128xbf16>
    %cst_28 = arith.constant dense<0.000000e+00> : vector<8x128xf32>
    %74 = tpu.matmul %72, %73, %cst_28 {dimension_numbers = #tpu.dot_dimension_numbers<[1], [0], [0], [1], [0, 0, 1, 1], [], []>} : vector<8x128xbf16>, vector<128x128xbf16>, vector<8x128xf32> -> vector<8x128xf32>
    %75 = arith.addf %74, %38 : vector<8x128xf32>
    %76 = arith.index_cast %arg0 : i32 to index
    %c0_29 = arith.constant 0 : index
    %c0_30 = arith.constant 0 : index
    %77 = vector.load %arg4[%76, %c0_29, %c0_30] : memref<4x8x128xf32, #tpu.memory_space<vmem>>, vector<1x8x128xf32>
    %78 = vector.shape_cast %77 : vector<1x8x128xf32> to vector<8x128xf32>
    %79 = arith.addf %75, %78 : vector<8x128xf32>
    %c0_31 = arith.constant 0 : index
    %c0_32 = arith.constant 0 : index
    %80 = vector.load %arg13[%c0_31, %c0_32] : memref<8x128xf32, #tpu.memory_space<vmem>>, vector<8x128xf32>
    tpu.vector_store %arg13[%c0_31, %c0_32], %71 {strides = array<i32>} : memref<8x128xf32, #tpu.memory_space<vmem>>, vector<8x128xf32>,
    %81 = arith.index_cast %arg0 : i32 to index
    %c0_33 = arith.constant 0 : index
    %c0_34 = arith.constant 0 : index
    %82 = vector.load %arg11[%81, %c0_33, %c0_34] : memref<4x8x128xf32, #tpu.memory_space<vmem>>, vector<1x8x128xf32>
    %83 = vector.shape_cast %82 : vector<1x8x128xf32> to vector<8x128xf32>
    %84 = vector.shape_cast %79 : vector<8x128xf32> to vector<1x8x128xf32>
    tpu.vector_store %arg11[%81, %c0_33, %c0_34], %84 {strides = array<i32>} : memref<4x8x128xf32, #tpu.memory_space<vmem>>, vector<1x8x128xf32>,
    %c3_i32 = arith.constant 3 : i32
    %85 = arith.cmpi eq, %arg0, %c3_i32 : i32
    %86 = arith.extui %85 : i1 to i32
    %c0_i32_35 = arith.constant 0 : i32
    %87 = arith.cmpi ne, %86, %c0_i32_35 : i32
    scf.if %87 {
      %c0_36 = arith.constant 0 : index
      %c0_37 = arith.constant 0 : index
      %88 = vector.load %arg12[%c0_36, %c0_37] : memref<8x128xf32, #tpu.memory_space<vmem>>, vector<8x128xf32>
      tpu.vector_store %arg12[%c0_36, %c0_37], %71 {strides = array<i32>} : memref<8x128xf32, #tpu.memory_space<vmem>>, vector<8x128xf32>,
    } else {
    }
    return
  }
  func.func @transform_0(%arg0: i32) -> (i32, i32) {
    %c0_i32 = arith.constant 0 : i32
    %c0_i32_0 = arith.constant 0 : i32
    %c0_i32_1 = arith.constant 0 : i32
    return %c0_i32, %c0_i32_0 : i32, i32
  }
  func.func @transform_1(%arg0: i32) -> (i32, i32, i32) {
    %c0_i32 = arith.constant 0 : i32
    %c0_i32_0 = arith.constant 0 : i32
    %c0_i32_1 = arith.constant 0 : i32
    %c0_i32_2 = arith.constant 0 : i32
    return %c0_i32, %c0_i32_0, %c0_i32_1 : i32, i32, i32
  }
  func.func @transform_2(%arg0: i32) -> (i32, i32, i32) {
    %c0_i32 = arith.constant 0 : i32
    %c0_i32_0 = arith.constant 0 : i32
    %c0_i32_1 = arith.constant 0 : i32
    %c0_i32_2 = arith.constant 0 : i32
    return %c0_i32, %c0_i32_0, %c0_i32_1 : i32, i32, i32
  }
  func.func @transform_3(%arg0: i32) -> (i32, i32, i32) {
    %c0_i32 = arith.constant 0 : i32
    %c0_i32_0 = arith.constant 0 : i32
    %c0_i32_1 = arith.constant 0 : i32
    %c0_i32_2 = arith.constant 0 : i32
    return %c0_i32, %c0_i32_0, %c0_i32_1 : i32, i32, i32
  }
  func.func @transform_4(%arg0: i32) -> (i32, i32) {
    %c0_i32 = arith.constant 0 : i32
    %c0_i32_0 = arith.constant 0 : i32
    %c0_i32_1 = arith.constant 0 : i32
    return %c0_i32, %c0_i32_0 : i32, i32
  }
  func.func @transform_5(%arg0: i32) -> (i32, i32) {
    %c0_i32 = arith.constant 0 : i32
    %c0_i32_0 = arith.constant 0 : i32
    %c0_i32_1 = arith.constant 0 : i32
    return %c0_i32, %c0_i32_0 : i32, i32
  }
  func.func @transform_6(%arg0: i32) -> (i32, i32) {
    %c0_i32 = arith.constant 0 : i32
    %c0_i32_0 = arith.constant 0 : i32
    %c0_i32_1 = arith.constant 0 : i32
    return %c0_i32, %c0_i32_0 : i32, i32
  }
  func.func @transform_7(%arg0: i32) -> (i32, i32) {
    %c0_i32 = arith.constant 0 : i32
    %c0_i32_0 = arith.constant 0 : i32
    %c0_i32_1 = arith.constant 0 : i32
    return %c0_i32, %c0_i32_0 : i32, i32
  }
  func.func @transform_8(%arg0: i32) -> (i32, i32) {
    %c0_i32 = arith.constant 0 : i32
    %c0_i32_0 = arith.constant 0 : i32
    %c0_i32_1 = arith.constant 0 : i32
    return %c0_i32, %c0_i32_0 : i32, i32
  }
  func.func @transform_9(%arg0: i32) -> (i32, i32) {
    %c0_i32 = arith.constant 0 : i32
    %c0_i32_0 = arith.constant 0 : i32
    %c0_i32_1 = arith.constant 0 : i32
    return %c0_i32, %c0_i32_0 : i32, i32
  }
  func.func @transform_10(%arg0: i32) -> (i32, i32, i32) {
    %c0_i32 = arith.constant 0 : i32
    %c0_i32_0 = arith.constant 0 : i32
    %c0_i32_1 = arith.constant 0 : i32
    %c0_i32_2 = arith.constant 0 : i32
    return %c0_i32, %c0_i32_0, %c0_i32_1 : i32, i32, i32
  }
  func.func @transform_11(%arg0: i32) -> (i32, i32) {
    %c0_i32 = arith.constant 0 : i32
    %c0_i32_0 = arith.constant 0 : i32
    %c0_i32_1 = arith.constant 0 : i32
    return %c0_i32, %c0_i32_0 : i32, i32
  }
}

</mosaic_0001>

<bundles_post_ra>
// kernel: decoder_forward.1
= control target key start
LH: loop header
LB: loop body
LE: loop exit
PB: predicated region body
PF: predicated region fallthrough
CT: control target
= control target key end

     0   :  { %17 = vsyncpa [#allocation6], 0  ;;  %s2969_s0 = inlined_call_operand.hbm [shape: f32[8,128], index: 0, kind: input, shape index: {}]   ;;  %s2970_s1 = inlined_call_operand.vmem [shape: bf16[8,8,128], index: 1, kind: input, shape index: {}]   ;;  %s2971_s2 = inlined_call_operand.vmem [shape: f32[4,8,384], index: 2, kind: input, shape index: {}]   ;;  %s2972_s3 = inlined_call_operand.vmem [shape: f32[4,8,128], index: 3, kind: input, shape index: {}]   ;;  %s2973_s4 = inlined_call_operand.vmem [shape: bf16[128,128], index: 4, kind: input, shape index: {}]   ;;  %s2974_s5 = inlined_call_operand.vmem [shape: bf16[128,512], index: 5, kind: input, shape index: {}]   ;;  %s2975_s6 = inlined_call_operand.vmem [shape: bf16[128,512], index: 6, kind: input, shape index: {}]   ;;  %s2976_s7 = inlined_call_operand.vmem [shape: bf16[128,128], index: 7, kind: input, shape index: {}]   ;;  %s2977_s8 = inlined_call_operand.vmem [shape: f32[1,128], index: 8, kind: input, shape index: {}]   ;;  %s2978_s9 = inlined_call_operand.vmem [shape: f32[1,128], index: 9, kind: input, shape index: {}]   ;;  %s2979_s10 = inlined_call_operand.hbm [shape: f32[4,8,128], index: 10, kind: output, shape index: {0}]   ;;  %s2980_s11 = inlined_call_operand.hbm [shape: f32[8,128], index: 11, kind: output, shape index: {1}]  }
   0x1   :  { %18 = vsyncpa [#allocation7], 0 }
   0x2   :  { %19 = vsyncpa [#allocation10], 0  ;;  %s2454_s17 = smov 0  }
   0x3 LB: > { %s2460_s18 = sadd.s32 4294967295, %s2383_s17   ;;  %p1880_p0 = scmp.ge.s32.totalorder %s2383_s17, 1  ;;  %s2383_s17 = sphi %s2454_s17, %s25_s17  }
   0x4   : > { %p282_p1 = scmp.lt.s32.totalorder %s2383_s17, 5  ;;  %p2981_p4 = scmp.eq.s32.totalorder %s2460_s18, 0 }
   0x5   : > { %s2385_s20 = smov [#allocation5]   ;;  %s2285_s25 = scalar_lea.hbm %s2969_s0, 128 }
   0x6   : > { %p2465_p3 = pnand %p1880_p0, %p282_p1  ;;  %s295_s21 = sshll.u32 %s2385_s20, 4  ;;  %s296_s21 = int_to_ptr.vmem [resolvable:$true] %s295_s21 }
   0x7   : > { %p2286_p7 = scmp.ne.s32.totalorder %s2969_s0, %s2285_s25  ;;  %p2292_p11 = scmp.lt.u32.totalorder %s2285_s25, %s2969_s0 }
   0x8   : > { %s2983_s19 = scalar_select %p2465_p3, 1, 0 }
   0x9   : > { %p2095_p5 = pneg %p2465_p3 }
   0xb   : > { %p2474_p6 = pnand %p2981_p4, %p2095_p5 }
   0xd   : > { %p2287_p8 = pneg %p2474_p6 }
   0xf   : > { %p2288_p9 = pnand %p2287_p8, %p2286_p7 }
  0x11   : > { %p2289_p10 = pneg %p2288_p9 }
  0x13   : > { %p2294_p12 = pnand %p2292_p11, %p2289_p10 }
  0x15   : > { %2297 = shalt.err (!%p2294_p12)
}
  0x16   : > { %s2298_s30 = scalar_lea.vmem %s296_s21, 128  ;;  %p2306_p5 = scmp.lt.s32.totalorder %s296_s21, %s296_s21 }
  0x17   : > { %p2299_p13 = scmp.ne.s32.totalorder %s296_s21, %s2298_s30  ;;  %p2307_p2 = scmp.lt.s32.totalorder %s2298_s30, %s2298_s30 }
  0x19   : > { %p2301_p0 = pnand %p2299_p13, %p2287_p8  ;;  %p2308_p4 = por %p2307_p2, %p2306_p5 }
  0x1b   : > { %p2302_p1 = pneg %p2301_p0 }
  0x1d   : > { %p2309_p3 = pnand %p2308_p4, %p2302_p1 }
  0x1f   : > { %2312 = shalt.err (!%p2309_p3)
}
  0x20   : > { %2098 = dma.hbm_to_vmem [thread:$0]  (!%p2474_p6), %s2969_s0, 128, %s296_s21, [#allocation6]  }
  0x21   : > { %p2985_p7 = scmp.ne.s32.totalorder %s2983_s19, 0 }
  0x22   : > { %p2986_p9 = scmp.eq.s32.totalorder (!%p2985_p7), %s2460_s18, 0 }
  0x23   : > { %335 = sbr.rel (%p2985_p7) target bundleno = 1903 (0x76f), region = 60 }
  0x2a   : > { %2370 = dma.done.wait (%p2986_p9), [#allocation6], 128   ;;  %p2987_p8 = pmov %p2986_p9 }
  0x2b   : > { %p2988_p10 = scmp.ne.s32.totalorder %s2460_s18, 0 }
  0x2c   : > { %2372 = vsyncadd (%p2987_p8), [#allocation6], 4294967168  ;;  %v370_v0 = vld [vmem:[#allocation5] sm:$0xff] (!%p2988_p10)  ;;  %v1984_v1 = vld [vmem:[%s2970_s1] sm:$0xff] (!%p2988_p10)  }
  0x2d   : > { %369 = sbr.rel (%p2988_p10) target bundleno = 295 (0x127), region = 68  ;;  %v1999_v2 = vld [vmem:[%s2970_s1 + $0x8] sm:$0xff] (!%p2988_p10)   ;;  %371 = vst [vmem:[#allocation2] sm:$0xff] (!%p2988_p10), %v370_v0  ;;  %v1985_v3 = vunpack.c.l.bf16 (!%p2988_p10), %v1984_v1  ;;  %v1986_v4 = vunpack.c.h.bf16 (!%p2988_p10), %v1984_v1  ;;  %v2000_v7 = vld [vmem:[%s2970_s1 + $0x10] sm:$0xff] (!%p2988_p10)   ;;  %v2001_v8 = vld [vmem:[%s2970_s1 + $0x18] sm:$0xff] (!%p2988_p10)  }
  0x2e   : > { %v1989_v5 = vunpack.c.l.bf16 (!%p2988_p10), %v1999_v2  ;;  %v1990_v6 = vunpack.c.h.bf16 (!%p2988_p10), %v1999_v2  ;;  %v1993_v9 = vunpack.c.l.bf16 (!%p2988_p10), %v2000_v7  ;;  %v1994_v10 = vunpack.c.h.bf16 (!%p2988_p10), %v2000_v7  ;;  %v2122_v13 = vld [vmem:[%s2973_s4] sm:$0xff] (!%p2988_p10)   ;;  %v2123_v14 = vld [vmem:[%s2973_s4 + $0x8] sm:$0xff] (!%p2988_p10)   ;;  %v2124_v15 = vld [vmem:[%s2973_s4 + $0x10] sm:$0xff] (!%p2988_p10)  }
  0x2f   : > { %v1997_v11 = vunpack.c.l.bf16 (!%p2988_p10), %v2001_v8  ;;  %v1998_v12 = vunpack.c.h.bf16 (!%p2988_p10), %v2001_v8  ;;  %388 = vst [vmem:[#allocation4] sm:$0xff] (!%p2988_p10), %v1985_v3  ;;  %389 = vst [vmem:[#allocation4 + $0x8] sm:$0xff] (!%p2988_p10), %v1986_v4  ;;  %2023 = vmatprep.subr.bf16.mxu0 (!%p2988_p10), %v2122_v13  ;;  %2067 = vmatprep.subr.bf16.mxu1 (!%p2988_p10), %v2122_v13  ;;  %v2125_v16 = vld [vmem:[%s2973_s4 + $0x18] sm:$0xff] (!%p2988_p10)   ;;  %v2130_v17 = vld [vmem:[%s2970_s1] sm:$0xff] (!%p2988_p10)  }
  0x30   : > { %390 = vst [vmem:[#allocation4 + $0x10] sm:$0xff] (!%p2988_p10), %v1989_v5  ;;  %391 = vst [vmem:[#allocation4 + $0x18] sm:$0xff] (!%p2988_p10), %v1990_v6  ;;  %2024 = vmatpush3.bf16.msra.mxu0 (!%p2988_p10), %v2122_v13  ;;  %2075 = vmatpush3.bf16.msra.mxu1 (!%p2988_p10), %v2122_v13  ;;  %v2131_v18 = vld [vmem:[%s2970_s1 + $0x10] sm:$0xff] (!%p2988_p10)   ;;  %v2126_v19 = vld [vmem:[%s2973_s4 + $0x20] sm:$0xff] (!%p2988_p10)  }
  0x31   : > { %392 = vst [vmem:[#allocation4 + $0x20] sm:$0xff] (!%p2988_p10), %v1993_v9  ;;  %393 = vst [vmem:[#allocation4 + $0x28] sm:$0xff] (!%p2988_p10), %v1994_v10  ;;  %2025 = vmatprep.subr.bf16.mxu0 (!%p2988_p10), %v2123_v14  ;;  %2068 = vmatprep.subr.bf16.mxu1 (!%p2988_p10), %v2123_v14  ;;  %v2127_v20 = vld [vmem:[%s2973_s4 + $0x28] sm:$0xff] (!%p2988_p10)   ;;  %v2128_v21 = vld [vmem:[%s2973_s4 + $0x30] sm:$0xff] (!%p2988_p10)  }
  0x32   : > { %394 = vst [vmem:[#allocation4 + $0x30] sm:$0xff] (!%p2988_p10), %v1997_v11  ;;  %395 = vst [vmem:[#allocation4 + $0x38] sm:$0xff] (!%p2988_p10), %v1998_v12  ;;  %2039 = vmatprep.mubr.bf16.mxu0 (!%p2988_p10), %v2130_v17  ;;  %2043 = vmatprep.mubr.bf16.mxu1 (!%p2988_p10), %v2131_v18  ;;  %v2129_v22 = vld [vmem:[%s2973_s4 + $0x38] sm:$0xff] (!%p2988_p10)   ;;  %v2132_v23 = vld [vmem:[%s2970_s1 + $0x8] sm:$0xff] (!%p2988_p10)  }
  0x33   : > { %v2133_v24 = vld [vmem:[%s2970_s1 + $0x18] sm:$0xff] (!%p2988_p10)  }
  0x34   : > { %2026 = vmatpush3.bf16.msra.mxu0 %v2123_v14  ;;  %2076 = vmatpush3.bf16.msra.mxu1 %v2123_v14 }
  0x35   : > { %2027 = vmatprep.subr.bf16.mxu0 %v2124_v15  ;;  %2069 = vmatprep.subr.bf16.mxu1 %v2124_v15 }
  0x38   : > { %2028 = vmatpush3.bf16.msra.mxu0 %v2124_v15  ;;  %2077 = vmatpush3.bf16.msra.mxu1 %v2124_v15 }
  0x39   : > { %2029 = vmatprep.subr.bf16.mxu0 %v2125_v16  ;;  %2070 = vmatprep.subr.bf16.mxu1 %v2125_v16 }
  0x3c   : > { %2030 = vmatpush3.bf16.msra.mxu0 %v2125_v16  ;;  %2078 = vmatpush3.bf16.msra.mxu1 %v2125_v16 }
  0x3d   : > { %2031 = vmatprep.subr.bf16.mxu0 %v2126_v19  ;;  %2071 = vmatprep.subr.bf16.mxu1 %v2126_v19 }
  0x40   : > { %2032 = vmatpush3.bf16.msra.mxu0 %v2126_v19  ;;  %2079 = vmatpush3.bf16.msra.mxu1 %v2126_v19 }
  0x41   : > { %2033 = vmatprep.subr.bf16.mxu0 %v2127_v20  ;;  %2072 = vmatprep.subr.bf16.mxu1 %v2127_v20 }
  0x44   : > { %2034 = vmatpush3.bf16.msra.mxu0 %v2127_v20  ;;  %2080 = vmatpush3.bf16.msra.mxu1 %v2127_v20 }
  0x45   : > { %2035 = vmatprep.subr.bf16.mxu0 %v2128_v21  ;;  %2073 = vmatprep.subr.bf16.mxu1 %v2128_v21 }
  0x48   : > { %2036 = vmatpush3.bf16.msra.mxu0 %v2128_v21  ;;  %2081 = vmatpush3.bf16.msra.mxu1 %v2128_v21 }
  0x49   : > { %2037 = vmatprep.subr.bf16.mxu0 %v2129_v22  ;;  %2074 = vmatprep.subr.bf16.mxu1 %v2129_v22 }
  0x4c   : > { %2038 = vmatpush3.bf16.msra.mxu0 %v2129_v22  ;;  %2082 = vmatpush3.bf16.msra.mxu1 %v2129_v22 }
  0x4f   : > { %2040 = vmatmul.mubr.bf16.vlgmr.msra.gmra.mrb[0].mxu0 %v2132_v23  ;;  %2044 = vmatmul.mubr.bf16.vlgmr.msra.gmra.mrb[0].mxu1 %v2133_v24 }
 0x122   : > { %v2041_v25 = vpop.f32.mrb[0].mxu0  ;;  %v2045_v26 = vpop.f32.mrb[0].mxu1 }
 0x123   : > { %559 = vst [vmem:[#allocation3 + $0x10] sm:$0xff] %v2041_v25  ;;  %563 = vst [vmem:[#allocation3 + $0x30] sm:$0xff] %v2045_v26  ;;  %v526_v27 = vpop.f32.mrb[1].mxu0  ;;  %v542_v28 = vpop.f32.mrb[1].mxu1 }
 0x124   : > { %557 = vst [vmem:[#allocation3] sm:$0xff] %v526_v27  ;;  %561 = vst [vmem:[#allocation3 + $0x20] sm:$0xff] %v542_v28  ;;  %v2042_v29 = vpop.f32.mrb[2].mxu0  ;;  %v2046_v30 = vpop.f32.mrb[2].mxu1 }
 0x125   : > { %560 = vst [vmem:[#allocation3 + $0x18] sm:$0xff] %v2042_v29  ;;  %564 = vst [vmem:[#allocation3 + $0x38] sm:$0xff] %v2046_v30  ;;  %v529_v31 = vpop.f32.mrb[3].mxu0  ;;  %v545_v32 = vpop.f32.mrb[3].mxu1 }
 0x126   : > { %558 = vst [vmem:[#allocation3 + $0x8] sm:$0xff] %v529_v31  ;;  %562 = vst [vmem:[#allocation3 + $0x28] sm:$0xff] %v545_v32 }
 0x127 PF: > { %v2136_v33 = vld [vmem:[%s2974_s5 + $0x4] ss:$16 sps:$4 sm:$0xff]   ;;  %v2138_v34 = vld [vmem:[%s2974_s5] ss:$16 sps:$4 sm:$0xff]   ;;  %v2386_v35 = vmov 0   ;;  %v854_v54 = vlaneseq  ;;  %vm1028_vm0 = vcmask 1041409  }
 0x128   : > { %791 = vmatprep.mubr.bf16.mxu0 %v2386_v35  ;;  %2135 = vset.pattern.permute.xlu0 %v2386_v35  ;;  %v2139_v36 = vld [vmem:[%s2974_s5 + $0x24] ss:$16 sps:$4 sm:$0xff]   ;;  %v2141_v37 = vld [vmem:[%s2974_s5 + $0x20] ss:$16 sps:$4 sm:$0xff]   ;;  %v2387_v52 = vmov 1966171168  }
 0x129   : > { %759 = vmatprep.subr.bf16.mxu0 %v2136_v33  ;;  %2134 = vset.pattern.permute.xlu1 %v2386_v35  ;;  %v2142_v38 = vld [vmem:[%s2974_s5 + $0x44] ss:$16 sps:$4 sm:$0xff]   ;;  %v2144_v39 = vld [vmem:[%s2974_s5 + $0x40] ss:$16 sps:$4 sm:$0xff]   ;;  %v852_v53 = vunpack.c.l.s4 %v2387_v52  ;;  %v2607_v56 = vshrl.u32 %v854_v54, 7  ;;  %vm1030_vm1 = vcmask 1042434  }
 0x12a   : > { %760 = vmatpush1.bf16.msra.mxu0 %v2138_v34  ;;  %832 = vmatprep.mubr.bf16.mxu1 %v2386_v35  ;;  %v2145_v40 = vld [vmem:[%s2974_s5 + $0x64] ss:$16 sps:$4 sm:$0xff]   ;;  %v2147_v41 = vld [vmem:[%s2974_s5 + $0x60] ss:$16 sps:$4 sm:$0xff]   ;;  %v843_v11 = vld [vmem:[#allocation3 + $0x10] sm:$0xff]  ;;  %vm1032_vm2 = vcmask 1043459  }
 0x12b   : > { %761 = vmatprep.subr.bf16.mxu0 %v2139_v36  ;;  %v2148_v42 = vld [vmem:[%s2974_s5 + $0x84] ss:$16 sps:$4 sm:$0xff]   ;;  %v2150_v43 = vld [vmem:[%s2974_s5 + $0x80] ss:$16 sps:$4 sm:$0xff]   ;;  %v853_v55 = vunpack.c.0.s8 %v852_v53  ;;  %v2613_v62 = vsub.s32 0, %v2607_v56  ;;  %v841_v4 = vld [vmem:[#allocation3] sm:$0xff] }
 0x12c   : > { %v2151_v44 = vld [vmem:[%s2974_s5 + $0xa4] ss:$16 sps:$4 sm:$0xff]   ;;  %v2153_v45 = vld [vmem:[%s2974_s5 + $0xa0] ss:$16 sps:$4 sm:$0xff]   ;;  %v845_v20 = vld [vmem:[#allocation3 + $0x20] sm:$0xff]  ;;  %vm1034_vm3 = vcmask 1044484  }
 0x12d   : > { %v2154_v46 = vld [vmem:[%s2974_s5 + $0xc4] ss:$16 sps:$4 sm:$0xff]   ;;  %v2156_v47 = vld [vmem:[%s2974_s5 + $0xc0] ss:$16 sps:$4 sm:$0xff]   ;;  %v856_v57 = vsub.s32 %v853_v55, %v2607_v56  ;;  %v847_v30 = vld [vmem:[#allocation3 + $0x30] sm:$0xff]  ;;  %vm1036_vm4 = vcmask 1045509  }
 0x12e   : > { %762 = vmatpush1.bf16.msra.mxu0 %v2141_v37  ;;  %v2157_v48 = vld [vmem:[%s2974_s5 + $0xe4] ss:$16 sps:$4 sm:$0xff]   ;;  %v2159_v49 = vld [vmem:[%s2974_s5 + $0xe0] ss:$16 sps:$4 sm:$0xff]   ;;  %vm1038_vm5 = vcmask 1046534   ;;  %vm1040_vm6 = vcmask 1047559  }
 0x12f   : > { %763 = vmatprep.subr.bf16.mxu0 %v2142_v38  ;;  %v565_v50 = vld [vmem:[#allocation2] sm:$0xff]  ;;  %v842_v10 = vld [vmem:[#allocation3 + $0x8] sm:$0xff]  ;;  %vm1043_vm7 = vcmask 64512   ;;  %vm2389_vm8 = vmmov 0   ;;  %s1982_s24 = smul.u32 24, %s2460_s18  ;;  %s1974_s30 = sshll.u32 %s2460_s18, 3 }
 0x130   : > { %v2602_v51 = vpack.c.bf16 %v565_v50, %v565_v50  ;;  %v844_v15 = vld [vmem:[#allocation3 + $0x18] sm:$0xff]  ;;  %v846_v27 = vld [vmem:[#allocation3 + $0x28] sm:$0xff]  ;;  %s1792_s14 = scalar_lea.vmem %s2972_s3, %s1974_s30  ;;  %s1796_s15 = scalar_lea.vmem [#allocation8], %s1974_s30 }
 0x131   : > { %v848_v34 = vld [vmem:[#allocation3 + $0x38] sm:$0xff]  ;;  %s1650_s27 = scalar_lea.vmem %s2971_s2, %s1982_s24  ;;  %p1975_p2 = scmp.ne.s32.totalorder %s2460_s18, 3 }
 0x132   : > { %764 = vmatpush1.bf16.msra.mxu0 %v2144_v39  ;;  %v1929_v36 = vld [vmem:[%s2977_s8] ss:$0 sm:$0xff] }
 0x133   : > { %765 = vmatprep.subr.bf16.mxu0 %v2145_v40 }
 0x136   : > { %766 = vmatpush1.bf16.msra.mxu0 %v2147_v41 }
 0x137   : > { %767 = vmatprep.subr.bf16.mxu0 %v2148_v42 }
 0x13a   : > { %768 = vmatpush1.bf16.msra.mxu0 %v2150_v43 }
 0x13b   : > { %769 = vmatprep.subr.bf16.mxu0 %v2151_v44 }
 0x13e   : > { %770 = vmatpush1.bf16.msra.mxu0 %v2153_v45 }
 0x13f   : > { %771 = vmatprep.subr.bf16.mxu0 %v2154_v46 }
 0x142   : > { %772 = vmatpush1.bf16.msra.mxu0 %v2156_v47 }
 0x143   : > { %773 = vmatprep.subr.bf16.mxu0 %v2157_v48 }
 0x146   : > { %774 = vmatpush1.bf16.msra.mxu0 %v2159_v49 }
 0x149   : > { %792 = vmatmul.mubr.bf16.vlgmr.msra.gmra.mrb[0].mxu0 %v2602_v51 }
 0x14a   : > { %1598 = vmatprep.mubr.bf16.mxu0 %v2386_v35 }
 0x21c   : > { %v793_v58 = vpop.f32.mrb[0].mxu0 }
 0x21d   : > { %v850_v59 = vcombine.high %v793_v58, %v793_v58  ;;  %v857_v60 = vrot.slane %v793_v58, %v856_v57  ;;  %v2610_v61 = vpop.f32.mrb[1].mxu0 }
 0x21e   : > { %v797_v63 = vpop.f32.mrb[2].mxu0 }
 0x21f   : > { %v864_v0 = vrot.slane %v850_v59, %v856_v57  ;;  %v865_v1 = vcombine.high %v857_v60, %v857_v60  ;;  %v873_v2 = vrot.slane %v857_v60, %v856_v57  ;;  %v798_v3 = vpop.f32.mrb[3].mxu0 }
 0x221   : > { %v866_v5 = vcombine.high %v864_v0, %v864_v0  ;;  %v880_v6 = vrot.slane %v864_v0, %v856_v57  ;;  %v887_v7 = vrot.slane %v865_v1, %v856_v57  ;;  %v895_v8 = vcombine.high %v873_v2, %v873_v2 }
 0x222   : > { %v902_v9 = vrot.slane %v873_v2, %v2613_v62 }
 0x223   : > { %v894_v12 = vrot.slane %v866_v5, %v856_v57  ;;  %v897_v13 = vcombine.high %v887_v7, %v887_v7  ;;  %v906_v14 = vrot.slane %v887_v7, %v2613_v62  ;;  %v896_v16 = vcombine.high %v880_v6, %v880_v6 }
 0x224   : > { %v910_v17 = vrot.slane %v895_v8, %v2613_v62  ;;  %v918_v18 = vrot.slane %v880_v6, %v2613_v62  ;;  %v939_v19 = vadd.f32 %v902_v9, %v841_v4  ;;  %v995_v57 = vand.u32 127, %v854_v54 }
 0x225   : > { %v914_v21 = vrot.slane %v897_v13, %v2613_v62  ;;  %v940_v22 = vadd.f32 %v906_v14, %v842_v10  ;;  %v898_v24 = vcombine.high %v894_v12, %v894_v12  ;;  %v922_v25 = vrot.slane %v894_v12, %v2613_v62 }
 0x226   : > { %v941_v23 = vadd.f32 %v910_v17, %v843_v11  ;;  %2240 = vtanh.f32 %v939_v19  ;;  %v926_v28 = vrot.slane %v896_v16, %v2613_v62  ;;  %v943_v29 = vadd.f32 %v918_v18, %v845_v20 }
 0x227   : > { %v942_v26 = vadd.f32 %v914_v21, %v844_v15  ;;  %2242 = vtanh.f32 %v940_v22  ;;  %v930_v31 = vrot.slane %v898_v24, %v2613_v62  ;;  %v944_v32 = vadd.f32 %v922_v25, %v846_v27 }
 0x228   : > { %2244 = vtanh.f32 %v941_v23  ;;  %v945_v33 = vadd.f32 %v926_v28, %v847_v30  ;;  %v2628_v59 = vsub.s32 %v995_v57, %v2607_v56  ;;  %v1054_v20 = vsub.s32 1, %v2607_v56 }
 0x229   : > { %2246 = vtanh.f32 %v942_v26  ;;  %v946_v37 = vadd.f32 %v930_v31, %v848_v34  ;;  %v1058_v21 = vsub.s32 2, %v2607_v56  ;;  %v1062_v22 = vsub.s32 3, %v2607_v56 }
 0x22a   : > { %2248 = vtanh.f32 %v943_v29  ;;  %v1066_v27 = vsub.s32 4, %v2607_v56  ;;  %v1070_v34 = vsub.s32 5, %v2607_v56 }
 0x22b   : > { %2250 = vtanh.f32 %v944_v32 }
 0x22c   : > { %2252 = vtanh.f32 %v945_v33 }
 0x22d   : > { %2254 = vtanh.f32 %v946_v37 }
 0x230   : > { %v2241_v38 = vpop.eup %2240 }
 0x231   : > { %v962_v39 = vmul.f32 %v2241_v38, %v1929_v36  ;;  %v2243_v40 = vpop.eup %2242 }
 0x232   : > { %v2245_v41 = vpop.eup %2244  ;;  %v963_v44 = vmul.f32 %v2243_v40, %v1929_v36 }
 0x233   : > { %970 = vadd.xlane.f32.xlu0 %v962_v39  ;;  %v964_v42 = vmul.f32 %v2245_v41, %v1929_v36  ;;  %v2247_v43 = vpop.eup %2246  ;;  %v1074_v39 = vsub.s32 6, %v2607_v56 }
 0x234   : > { %v2249_v45 = vpop.eup %2248  ;;  %v965_v46 = vmul.f32 %v2247_v43, %v1929_v36  ;;  %v1078_v43 = vsub.s32 7, %v2607_v56 }
 0x235   : > { %974 = vadd.xlane.f32.xlu1 %v964_v42  ;;  %v2251_v47 = vpop.eup %2250  ;;  %v966_v48 = vmul.f32 %v2249_v45, %v1929_v36 }
 0x236   : > { %v2253_v49 = vpop.eup %2252  ;;  %v967_v50 = vmul.f32 %v2251_v47, %v1929_v36 }
 0x237   : > { %972 = vadd.xlane.f32.xlu0 %v963_v44  ;;  %v2255_v52 = vpop.eup %2254  ;;  %v968_v53 = vmul.f32 %v2253_v49, %v1929_v36 }
 0x238   : > { %v969_v55 = vmul.f32 %v2255_v52, %v1929_v36 }
 0x239   : > { %976 = vadd.xlane.f32.xlu1 %v965_v46 }
 0x23b   : > { %978 = vadd.xlane.f32.xlu0 %v966_v48 }
 0x23d   : > { %980 = vadd.xlane.f32.xlu1 %v967_v50 }
 0x23f   : > { %982 = vadd.xlane.f32.xlu0 %v968_v53 }
 0x241   : > { %984 = vadd.xlane.f32.xlu1 %v969_v55 }
 0x2c0   : > { %v971_v58 = vpop.xlane.xlu0 %970 }
 0x2c1   : > { %v999_v0 = vrot.slane %v971_v58, %v2628_v59 }
 0x2c2   : > { %v975_v60 = vpop.xlane.xlu1 %974 }
 0x2c3   : > { %v1007_v2 = vrot.slane %v975_v60, %v2628_v59 }
 0x2c4   : > { %v973_v63 = vpop.xlane.xlu0 %972 }
 0x2c5   : > { %v1003_v1 = vrot.slane %v973_v63, %v2628_v59 }
 0x2c6   : > { %v977_v4 = vpop.xlane.xlu1 %976 }
 0x2c7   : > { %v1029_v3 = vsel %vm1028_vm0, %v1003_v1, %v999_v0  ;;  %v1011_v5 = vrot.slane %v977_v4, %v2628_v59 }
 0x2c8   : > { %v1031_v54 = vsel %vm1030_vm1, %v1007_v2, %v1029_v3  ;;  %v979_v6 = vpop.xlane.xlu0 %978 }
 0x2c9   : > { %v1015_v7 = vrot.slane %v979_v6, %v2628_v59  ;;  %v1033_v8 = vsel %vm1032_vm2, %v1011_v5, %v1031_v54 }
 0x2ca   : > { %v981_v10 = vpop.xlane.xlu1 %980 }
 0x2cb   : > { %v1035_v9 = vsel %vm1034_vm3, %v1015_v7, %v1033_v8  ;;  %v1019_v11 = vrot.slane %v981_v10, %v2628_v59 }
 0x2cc   : > { %v983_v12 = vpop.xlane.xlu0 %982 }
 0x2cd   : > { %v1023_v13 = vrot.slane %v983_v12, %v2628_v59  ;;  %v1037_v14 = vsel %vm1036_vm4, %v1019_v11, %v1035_v9 }
 0x2ce   : > { %v985_v15 = vpop.xlane.xlu1 %984 }
 0x2cf   : > { %v1039_v16 = vsel %vm1038_vm5, %v1023_v13, %v1037_v14  ;;  %v1027_v17 = vrot.slane %v985_v15, %v2628_v59 }
 0x2d1   : > { %v1041_v18 = vsel %vm1040_vm6, %v1027_v17, %v1039_v16 }
 0x2d2   : > { %v1044_v19 = vsel %vm1043_vm7, %v1041_v18, -inf }
 0x2d3   : > { %1045 = vmax.xlane.f32.xlu0 %v1044_v19 }
 0x360   : > { %v1046_v23 = vpop.xlane.xlu0 %1045 }
 0x361   : > { %v1051_v24 = vrot.slane %v1046_v23, %v2613_v62  ;;  %v1055_v25 = vrot.slane %v1046_v23, %v1054_v20  ;;  %v1059_v26 = vrot.slane %v1046_v23, %v1058_v21  ;;  %v1063_v28 = vrot.slane %v1046_v23, %v1062_v22 }
 0x362   : > { %v1067_v36 = vrot.slane %v1046_v23, %v1066_v27  ;;  %v1071_v40 = vrot.slane %v1046_v23, %v1070_v34  ;;  %v1075_v44 = vrot.slane %v1046_v23, %v1074_v39  ;;  %v1079_v49 = vrot.slane %v1046_v23, %v1078_v43 }
 0x363   : > { %v1088_v29 = vsub.f32 %v971_v58, %v1051_v24  ;;  %v1089_v30 = vsub.f32 %v973_v63, %v1055_v25  ;;  %v1090_v31 = vsub.f32 %v975_v60, %v1059_v26  ;;  %v1091_v37 = vsub.f32 %v977_v4, %v1063_v28 }
 0x364   : > { %v1092_v41 = vsub.f32 %v979_v6, %v1067_v36  ;;  %v1093_v45 = vsub.f32 %v981_v10, %v1071_v40  ;;  %v1094_v50 = vsub.f32 %v983_v12, %v1075_v44  ;;  %v1095_v55 = vsub.f32 %v985_v15, %v1079_v49  ;;  %v2168_v36 = vld [vmem:[%s2974_s5 + $0x48] ss:$16 sps:$4 sm:$0xff]  }
 0x365   : > { %v1096_v32 = vmul.f32 1.442695, %v1088_v29  ;;  %v1098_v33 = vmul.f32 1.442695, %v1089_v30  ;;  %v1100_v38 = vmul.f32 1.442695, %v1090_v31 }
 0x366   : > { %v1102_v42 = vmul.f32 1.442695, %v1091_v37  ;;  %v1104_v46 = vmul.f32 1.442695, %v1092_v41  ;;  %v1106_v52 = vmul.f32 1.442695, %v1093_v45 }
 0x367   : > { %2256 = vpow2.f32 %v1096_v32  ;;  %v1108_v57 = vmul.f32 1.442695, %v1094_v50  ;;  %v1110_v60 = vmul.f32 1.442695, %v1095_v55  ;;  %v2160_v30 = vld [vmem:[%s2974_s5 + $0xc] ss:$16 sps:$4 sm:$0xff]  }
 0x368   : > { %2258 = vpow2.f32 %v1098_v33  ;;  %v2162_v31 = vld [vmem:[%s2974_s5 + $0x8] ss:$16 sps:$4 sm:$0xff]   ;;  %v2163_v32 = vld [vmem:[%s2974_s5 + $0x2c] ss:$16 sps:$4 sm:$0xff]   ;;  %800 = vmatprep.subr.bf16.mxu1 %v2160_v30 }
 0x369   : > { %2260 = vpow2.f32 %v1100_v38  ;;  %801 = vmatpush1.bf16.msra.mxu1 %v2162_v31  ;;  %v2166_v33 = vld [vmem:[%s2974_s5 + $0x4c] ss:$16 sps:$4 sm:$0xff]   ;;  %v2171_v38 = vld [vmem:[%s2974_s5 + $0x68] ss:$16 sps:$4 sm:$0xff]   ;;  %v2226_v31 = vld [vmem:[%s2975_s6 + $0xe0] ss:$16 sps:$4 sm:$0xff]  }
 0x36a   : > { %2262 = vpow2.f32 %v1102_v42  ;;  %802 = vmatprep.subr.bf16.mxu1 %v2163_v32  ;;  %v2169_v37 = vld [vmem:[%s2974_s5 + $0x6c] ss:$16 sps:$4 sm:$0xff]   ;;  %v2229_v32 = vld [vmem:[%s2975_s6 + $0xe8] ss:$16 sps:$4 sm:$0xff]  }
 0x36b   : > { %2264 = vpow2.f32 %v1104_v46  ;;  %v2231_v30 = vld [vmem:[%s2975_s6 + $0xec] ss:$16 sps:$4 sm:$0xff]  }
 0x36c   : > { %2266 = vpow2.f32 %v1106_v52 }
 0x36d   : > { %2268 = vpow2.f32 %v1108_v57  ;;  %v2180_v57 = vld [vmem:[%s2974_s5 + $0xc8] ss:$16 sps:$4 sm:$0xff]  }
 0x36e   : > { %2270 = vpow2.f32 %v1110_v60 }
 0x371   : > { %v2666_v47 = vpop.eup %2256 }
 0x372   : > { %v2668_v48 = vpop.eup %2258  ;;  %1121 = vperm.xlu1 %2134, %v2666_v47  }
 0x373   : > { %1124 = vperm.xlu0 %2135, %v2668_v48   ;;  %v2674_v53 = vpop.eup %2260 }
 0x374   : > { %v2677_v58 = vpop.eup %2262 }
 0x375   : > { %v2680_v63 = vpop.eup %2264 }
 0x376   : > { %1127 = vperm.xlu1 %2134, %v2674_v53   ;;  %v2683_v0 = vpop.eup %2266 }
 0x377   : > { %v2686_v1 = vpop.eup %2268 }
 0x378   : > { %v2689_v2 = vpop.eup %2270 }
 0x37a   : > { %1130 = vperm.xlu1 %2134, %v2677_v58  }
 0x37e   : > { %1133 = vperm.xlu1 %2134, %v2680_v63  }
 0x382   : > { %1136 = vperm.xlu1 %2134, %v2683_v0  }
 0x386   : > { %1139 = vperm.xlu1 %2134, %v2686_v1  }
 0x38a   : > { %1142 = vperm.xlu1 %2134, %v2689_v2  }
 0x3f1   : > { %v1122_v3 = vpop.permute.xlu1 %1121 }
 0x3f2   : > { %v1125_v6 = vpop.permute.xlu0 %1124  ;;  %v1147_v9 = vrot.slane %v1122_v3, %v2628_v59 }
 0x3f3   : > { %v1151_v8 = vrot.slane %v1125_v6, %v2628_v59  ;;  %v2190_v6 = vld [vmem:[%s2975_s6 + $0x20] ss:$16 sps:$4 sm:$0xff]  }
 0x3f5   : > { %v1128_v4 = vpop.permute.xlu1 %1127  ;;  %v1176_v14 = vsel %vm1028_vm0, %v1151_v8, %v1147_v9  ;;  %v2196_v8 = vld [vmem:[%s2975_s6 + $0x40] ss:$16 sps:$4 sm:$0xff]   ;;  %v2204_v9 = vld [vmem:[%s2975_s6 + $0x64] ss:$16 sps:$4 sm:$0xff]  }
 0x3f6   : > { %v1155_v10 = vrot.slane %v1128_v4, %v2628_v59 }
 0x3f8   : > { %v1177_v16 = vsel %vm1030_vm1, %v1155_v10, %v1176_v14  ;;  %v2207_v10 = vld [vmem:[%s2975_s6 + $0x6c] ss:$16 sps:$4 sm:$0xff]  }
 0x3f9   : > { %v1131_v54 = vpop.permute.xlu1 %1130  ;;  %v2213_v14 = vld [vmem:[%s2975_s6 + $0x8c] ss:$16 sps:$4 sm:$0xff]  }
 0x3fa   : > { %v1159_v11 = vrot.slane %v1131_v54, %v2628_v59  ;;  %v2184_v54 = vld [vmem:[%s2975_s6] ss:$16 sps:$4 sm:$0xff]  }
 0x3fc   : > { %v1178_v18 = vsel %vm1032_vm2, %v1159_v11, %v1177_v16  ;;  %v2202_v11 = vld [vmem:[%s2975_s6 + $0x60] ss:$16 sps:$4 sm:$0xff]   ;;  %v2211_v16 = vld [vmem:[%s2975_s6 + $0x88] ss:$16 sps:$4 sm:$0xff]  }
 0x3fd   : > { %v1134_v5 = vpop.permute.xlu1 %1133 }
 0x3fe   : > { %v1163_v12 = vrot.slane %v1134_v5, %v2628_v59  ;;  %v2187_v5 = vld [vmem:[%s2975_s6 + $0x8] ss:$16 sps:$4 sm:$0xff]  }
 0x400   : > { %v1179_v19 = vsel %vm1034_vm3, %v1163_v12, %v1178_v18  ;;  %v2205_v12 = vld [vmem:[%s2975_s6 + $0x68] ss:$16 sps:$4 sm:$0xff]   ;;  %v2219_v18 = vld [vmem:[%s2975_s6 + $0xac] ss:$16 sps:$4 sm:$0xff]  }
 0x401   : > { %v1137_v7 = vpop.permute.xlu1 %1136 }
 0x402   : > { %v1167_v15 = vrot.slane %v1137_v7, %v2628_v59  ;;  %v2201_v7 = vld [vmem:[%s2975_s6 + $0x4c] ss:$16 sps:$4 sm:$0xff]  }
 0x404   : > { %v1180_v24 = vsel %vm1036_vm4, %v1167_v15, %v1179_v19  ;;  %v2208_v15 = vld [vmem:[%s2975_s6 + $0x80] ss:$16 sps:$4 sm:$0xff]  }
 0x405   : > { %v1140_v13 = vpop.permute.xlu1 %1139  ;;  %v2214_v19 = vld [vmem:[%s2975_s6 + $0xa0] ss:$16 sps:$4 sm:$0xff]  }
 0x406   : > { %v1171_v17 = vrot.slane %v1140_v13, %v2628_v59  ;;  %v2210_v13 = vld [vmem:[%s2975_s6 + $0x84] ss:$16 sps:$4 sm:$0xff]  }
 0x408   : > { %v1181_v26 = vsel %vm1038_vm5, %v1171_v17, %v1180_v24  ;;  %v2216_v17 = vld [vmem:[%s2975_s6 + $0xa4] ss:$16 sps:$4 sm:$0xff]  }
 0x409   : > { %v1143_v23 = vpop.permute.xlu1 %1142  ;;  %v2222_v24 = vld [vmem:[%s2975_s6 + $0xc4] ss:$16 sps:$4 sm:$0xff]  }
 0x40a   : > { %v1175_v25 = vrot.slane %v1143_v23, %v2628_v59  ;;  %v2165_v59 = vld [vmem:[%s2974_s5 + $0x28] ss:$16 sps:$4 sm:$0xff]  }
 0x40b   : > { %803 = vmatpush1.bf16.msra.mxu1 %v2165_v59  ;;  %v2217_v23 = vld [vmem:[%s2975_s6 + $0xa8] ss:$16 sps:$4 sm:$0xff]  }
 0x40c   : > { %v1182_v28 = vsel %vm1040_vm6, %v1175_v25, %v1181_v26  ;;  %804 = vmatprep.subr.bf16.mxu1 %v2166_v33  ;;  %v2225_v25 = vld [vmem:[%s2975_s6 + $0xcc] ss:$16 sps:$4 sm:$0xff]   ;;  %v2220_v26 = vld [vmem:[%s2975_s6 + $0xc0] ss:$16 sps:$4 sm:$0xff]  }
 0x40d   : > { %v1184_v29 = vsel %vm1043_vm7, %v1182_v28, 0.0  ;;  %v2223_v28 = vld [vmem:[%s2975_s6 + $0xc8] ss:$16 sps:$4 sm:$0xff]   ;;  %v1238_v33 = vld [vmem:[#allocation4 + $0x8] sm:$0xff] }
 0x40e   : > { %1185 = vadd.xlane.f32.xlu1 %v1184_v29  ;;  %v2228_v29 = vld [vmem:[%s2975_s6 + $0xe4] ss:$16 sps:$4 sm:$0xff]  }
 0x40f   : > { %805 = vmatpush1.bf16.msra.mxu1 %v2168_v36  ;;  %v1237_v36 = vld [vmem:[#allocation4] sm:$0xff] }
 0x410   : > { %806 = vmatprep.subr.bf16.mxu1 %v2169_v37 }
 0x413   : > { %807 = vmatpush1.bf16.msra.mxu1 %v2171_v38 }
 0x49b   : > { %v1186_v40 = vpop.xlane.xlu1 %1185 }
 0x49c   : > { %2272 = vrcp.f32 %v1186_v40 }
 0x4a6   : > { %v2273_v41 = vpop.eup %2272 }
 0x4a7   : > { %v1192_v42 = vrot.slane %v2273_v41, %v2613_v62  ;;  %v1196_v45 = vrot.slane %v2273_v41, %v1054_v20  ;;  %v1200_v49 = vrot.slane %v2273_v41, %v1058_v21  ;;  %v1204_v52 = vrot.slane %v2273_v41, %v1062_v22  ;;  %v2172_v62 = vld [vmem:[%s2974_s5 + $0x8c] ss:$16 sps:$4 sm:$0xff]   ;;  %v2174_v20 = vld [vmem:[%s2974_s5 + $0x88] ss:$16 sps:$4 sm:$0xff]  }
 0x4a8   : > { %808 = vmatprep.subr.bf16.mxu1 %v2172_v62  ;;  %v1208_v21 = vrot.slane %v2273_v41, %v1066_v27  ;;  %v2175_v22 = vld [vmem:[%s2974_s5 + $0xac] ss:$16 sps:$4 sm:$0xff]   ;;  %v1212_v55 = vrot.slane %v2273_v41, %v1070_v34  ;;  %v1216_v60 = vrot.slane %v2273_v41, %v1074_v39  ;;  %v1220_v4 = vrot.slane %v2273_v41, %v1078_v43  ;;  %v2186_v39 = vld [vmem:[%s2975_s6 + $0x4] ss:$16 sps:$4 sm:$0xff]  }
 0x4a9   : > { %v1229_v44 = vmul.f32 %v2666_v47, %v1192_v42  ;;  %v1230_v46 = vmul.f32 %v2668_v48, %v1196_v45  ;;  %v1231_v50 = vmul.f32 %v2674_v53, %v1200_v49  ;;  %809 = vmatpush1.bf16.msra.mxu1 %v2174_v20  ;;  %v1232_v47 = vmul.f32 %v2677_v58, %v1204_v52  ;;  %v2177_v48 = vld [vmem:[%s2974_s5 + $0xa8] ss:$16 sps:$4 sm:$0xff]   ;;  %v2178_v27 = vld [vmem:[%s2974_s5 + $0xcc] ss:$16 sps:$4 sm:$0xff]   ;;  %v2192_v43 = vld [vmem:[%s2975_s6 + $0x24] ss:$16 sps:$4 sm:$0xff]  }
 0x4aa   : > { %810 = vmatprep.subr.bf16.mxu1 %v2175_v22  ;;  %v1233_v53 = vmul.f32 %v2680_v63, %v1208_v21  ;;  %v1234_v58 = vmul.f32 %v2683_v0, %v1212_v55  ;;  %v2181_v34 = vld [vmem:[%s2974_s5 + $0xec] ss:$16 sps:$4 sm:$0xff]   ;;  %v2183_v63 = vld [vmem:[%s2974_s5 + $0xe8] ss:$16 sps:$4 sm:$0xff]   ;;  %v1235_v3 = vmul.f32 %v2686_v1, %v1216_v60  ;;  %1566 = vmatprep.subr.bf16.mxu0 %v2186_v39  ;;  %v1240_v49 = vld [vmem:[#allocation4 + $0x18] sm:$0xff] }
 0x4ab   : > { %1247 = vperm.xlu0 %2135, %v1229_v44   ;;  %v2189_v0 = vld [vmem:[%s2975_s6 + $0xc] ss:$16 sps:$4 sm:$0xff]   ;;  %v1236_v56 = vmul.f32 %v2689_v2, %v1220_v4  ;;  %1567 = vmatpush1.bf16.msra.mxu0 %v2184_v54  ;;  %v2198_v2 = vld [vmem:[%s2975_s6 + $0x44] ss:$16 sps:$4 sm:$0xff]  }
 0x4ac   : > { %v2195_v1 = vld [vmem:[%s2975_s6 + $0x2c] ss:$16 sps:$4 sm:$0xff]   ;;  %1568 = vmatprep.subr.bf16.mxu0 %v2192_v43 }
 0x4ad   : > { %811 = vmatpush1.bf16.msra.mxu1 %v2177_v48  ;;  %v1239_v41 = vld [vmem:[#allocation4 + $0x10] sm:$0xff]  ;;  %v1241_v48 = vld [vmem:[#allocation4 + $0x20] sm:$0xff] }
 0x4ae   : > { %812 = vmatprep.subr.bf16.mxu1 %v2178_v27  ;;  %v1243_v43 = vld [vmem:[#allocation4 + $0x30] sm:$0xff] }
 0x4af   : > { %1252 = vperm.xlu0 %2135, %v1230_v46   ;;  %1569 = vmatpush1.bf16.msra.mxu0 %v2190_v6 }
 0x4b0   : > { %1570 = vmatprep.subr.bf16.mxu0 %v2198_v2 }
 0x4b1   : > { %813 = vmatpush1.bf16.msra.mxu1 %v2180_v57 }
 0x4b2   : > { %814 = vmatprep.subr.bf16.mxu1 %v2181_v34  ;;  %v1242_v34 = vld [vmem:[#allocation4 + $0x28] sm:$0xff] }
 0x4b3   : > { %1257 = vperm.xlu0 %2135, %v1231_v50   ;;  %1571 = vmatpush1.bf16.msra.mxu0 %v2196_v8 }
 0x4b4   : > { %1572 = vmatprep.subr.bf16.mxu0 %v2204_v9 }
 0x4b5   : > { %815 = vmatpush1.bf16.msra.mxu1 %v2183_v63 }
 0x4b6   : > { %1607 = vmatprep.subr.bf16.mxu1 %v2189_v0 }
 0x4b7   : > { %1262 = vperm.xlu0 %2135, %v1232_v47   ;;  %1573 = vmatpush1.bf16.msra.mxu0 %v2202_v11 }
 0x4b8   : > { %833 = vmatmul.mubr.bf16.vlgmr.msra.gmra.mrb[0].mxu1 %v2602_v51  ;;  %v2193_v51 = vld [vmem:[%s2975_s6 + $0x28] ss:$16 sps:$4 sm:$0xff]   ;;  %1574 = vmatprep.subr.bf16.mxu0 %v2210_v13 }
 0x4b9   : > { %1608 = vmatpush1.bf16.msra.mxu1 %v2187_v5  ;;  %1639 = vmatprep.mubr.bf16.mxu1 %v2386_v35  ;;  %v2199_v35 = vld [vmem:[%s2975_s6 + $0x48] ss:$16 sps:$4 sm:$0xff]  }
 0x4ba   : > { %1609 = vmatprep.subr.bf16.mxu1 %v2195_v1 }
 0x4bb   : > { %1267 = vperm.xlu0 %2135, %v1233_v53   ;;  %1575 = vmatpush1.bf16.msra.mxu0 %v2208_v15 }
 0x4bc   : > { %1576 = vmatprep.subr.bf16.mxu0 %v2216_v17 }
 0x4bd   : > { %1610 = vmatpush1.bf16.msra.mxu1 %v2193_v51 }
 0x4be   : > { %1611 = vmatprep.subr.bf16.mxu1 %v2201_v7 }
 0x4bf   : > { %1272 = vperm.xlu0 %2135, %v1234_v58   ;;  %1577 = vmatpush1.bf16.msra.mxu0 %v2214_v19 }
 0x4c0   : > { %1578 = vmatprep.subr.bf16.mxu0 %v2222_v24 }
 0x4c1   : > { %1612 = vmatpush1.bf16.msra.mxu1 %v2199_v35 }
 0x4c2   : > { %1613 = vmatprep.subr.bf16.mxu1 %v2207_v10 }
 0x4c3   : > { %1277 = vperm.xlu0 %2135, %v1235_v3   ;;  %1579 = vmatpush1.bf16.msra.mxu0 %v2220_v26 }
 0x4c4   : > { %1580 = vmatprep.subr.bf16.mxu0 %v2228_v29 }
 0x4c5   : > { %1614 = vmatpush1.bf16.msra.mxu1 %v2205_v12  ;;  %v1244_v12 = vld [vmem:[#allocation4 + $0x38] sm:$0xff] }
 0x4c6   : > { %1615 = vmatprep.subr.bf16.mxu1 %v2213_v14 }
 0x4c7   : > { %1282 = vperm.xlu0 %2135, %v1236_v56   ;;  %1581 = vmatpush1.bf16.msra.mxu0 %v2226_v31 }
 0x4c9   : > { %1616 = vmatpush1.bf16.msra.mxu1 %v2211_v16 }
 0x4ca   : > { %1617 = vmatprep.subr.bf16.mxu1 %v2219_v18 }
 0x4cd   : > { %1618 = vmatpush1.bf16.msra.mxu1 %v2217_v23 }
 0x4ce   : > { %1619 = vmatprep.subr.bf16.mxu1 %v2225_v25 }
 0x4d1   : > { %1620 = vmatpush1.bf16.msra.mxu1 %v2223_v28 }
 0x4d2   : > { %1621 = vmatprep.subr.bf16.mxu1 %v2231_v30 }
 0x4d5   : > { %1622 = vmatpush1.bf16.msra.mxu1 %v2229_v32 }
 0x52a   : > { %v1248_v59 = vpop.permute.xlu0 %1247 }
 0x52b   : > { %v1285_v40 = vmul.f32 %v1248_v59, %v1237_v36 }
 0x52d   : > { %v1293_v46 = vrot.slane %v1285_v40, 4 }
 0x52e   : > { %v1253_v37 = vpop.permute.xlu0 %1252 }
 0x52f   : > { %v1286_v38 = vmul.f32 %v1253_v37, %v1238_v33  ;;  %v1294_v47 = vadd.f32 %v1293_v46, %v1285_v40 }
 0x531   : > { %v1299_v44 = vrot.slane %v1286_v38, 4  ;;  %v1295_v57 = vrot.slane %v1294_v47, 2 }
 0x532   : > { %v1258_v42 = vpop.permute.xlu0 %1257 }
 0x533   : > { %v1287_v45 = vmul.f32 %v1258_v42, %v1239_v41  ;;  %v1300_v62 = vadd.f32 %v1299_v44, %v1286_v38  ;;  %v1296_v54 = vadd.f32 %v1295_v57, %v1294_v47 }
 0x535   : > { %v1305_v50 = vrot.slane %v1287_v45, 4  ;;  %v1301_v55 = vrot.slane %v1300_v62, 2  ;;  %v1297_v9 = vrot.slane %v1296_v54, 1 }
 0x536   : > { %v1263_v52 = vpop.permute.xlu0 %1262 }
 0x537   : > { %v1288_v20 = vmul.f32 %v1263_v52, %v1240_v49  ;;  %v1306_v21 = vadd.f32 %v1305_v50, %v1287_v45  ;;  %v1302_v39 = vadd.f32 %v1301_v55, %v1300_v62  ;;  %v1298_v25 = vadd.f32 %v1297_v9, %v1296_v54  ;;  %v2237_v9 = vld [vmem:[%s2976_s7 + $0x28] sm:$0xff]  }
 0x539   : > { %v1311_v22 = vrot.slane %v1288_v20, 4  ;;  %v1307_v58 = vrot.slane %v1306_v21, 2  ;;  %v1303_v7 = vrot.slane %v1302_v39, 1  ;;  %v1341_v40 = vpack.c.bf16 %v1298_v25, %v1298_v25 }
 0x53a   : > { %v1268_v53 = vpop.permute.xlu0 %1267 }
 0x53b   : > { %v1312_v27 = vadd.f32 %v1311_v22, %v1288_v20  ;;  %v1289_v60 = vmul.f32 %v1268_v53, %v1241_v48  ;;  %v1308_v5 = vadd.f32 %v1307_v58, %v1306_v21  ;;  %v1304_v18 = vadd.f32 %v1303_v7, %v1302_v39  ;;  %v2234_v7 = vld [vmem:[%s2976_s7 + $0x10] sm:$0xff]  }
 0x53c   : > { %v1389_v20 = vunpack.c.l.b16 %v1341_v40 }
 0x53d   : > { %v1313_v63 = vrot.slane %v1312_v27, 2  ;;  %v1317_v3 = vrot.slane %v1289_v60, 4  ;;  %v1309_v10 = vrot.slane %v1308_v5, 1  ;;  %v1342_v59 = vpack.c.bf16 %v1304_v18, %v1304_v18 }
 0x53e   : > { %v1273_v4 = vpop.permute.xlu0 %1272 }
 0x53f   : > { %v1290_v0 = vmul.f32 %v1273_v4, %v1242_v34  ;;  %v1318_v56 = vadd.f32 %v1317_v3, %v1289_v60  ;;  %v1314_v1 = vadd.f32 %v1313_v63, %v1312_v27  ;;  %v1310_v26 = vadd.f32 %v1309_v10, %v1308_v5  ;;  %v2238_v10 = vld [vmem:[%s2976_s7 + $0x30] sm:$0xff]  }
 0x540   : > { %v1390_v46 = vunpack.c.l.b16 %v1342_v59 }
 0x541   : > { %v1323_v6 = vrot.slane %v1290_v0, 4  ;;  %v1319_v51 = vrot.slane %v1318_v56, 2  ;;  %v1315_v13 = vrot.slane %v1314_v1, 1  ;;  %v1343_v38 = vpack.c.bf16 %v1310_v26, %v1310_v26 }
 0x542   : > { %v1278_v2 = vpop.permute.xlu0 %1277  ;;  %v1397_v53 = vsel %vm1028_vm0, %v1390_v46, %v1389_v20 }
 0x543   : > { %v1324_v8 = vadd.f32 %v1323_v6, %v1290_v0  ;;  %v1291_v35 = vmul.f32 %v1278_v2, %v1243_v43  ;;  %v1320_v11 = vadd.f32 %v1319_v51, %v1318_v56  ;;  %v1316_v28 = vadd.f32 %v1315_v13, %v1314_v1  ;;  %v2232_v6 = vld [vmem:[%s2976_s7] sm:$0xff]   ;;  %v2233_v2 = vld [vmem:[%s2976_s7 + $0x8] sm:$0xff]  }
 0x544   : > { %v1391_v62 = vunpack.c.l.b16 %v1343_v38  ;;  %v2388_v51 = vmov 0.0   ;;  %v1652_v13 = vld [vmem:[%s1650_s27 + $0x8] sm:$0xff]  ;;  %v1653_v38 = vld [vmem:[%s1650_s27 + $0x10] sm:$0xff] }
 0x545   : > { %v1325_v14 = vrot.slane %v1324_v8, 2  ;;  %v1329_v15 = vrot.slane %v1291_v35, 4  ;;  %v1321_v16 = vrot.slane %v1320_v11, 1  ;;  %v1344_v41 = vpack.c.bf16 %v1316_v28, %v1316_v28  ;;  %2047 = vmatprep.subr.bf16.mxu0 %v2388_v51 }
 0x546   : > { %v1283_v17 = vpop.permute.xlu0 %1282  ;;  %v1398_v57 = vsel %vm1030_vm1, %v1391_v62, %v1397_v53 }
 0x547   : > { %v1326_v19 = vadd.f32 %v1325_v14, %v1324_v8  ;;  %v1330_v23 = vadd.f32 %v1329_v15, %v1291_v35  ;;  %v1292_v24 = vmul.f32 %v1283_v17, %v1244_v12  ;;  %v1322_v32 = vadd.f32 %v1321_v16, %v1320_v11  ;;  %v2235_v8 = vld [vmem:[%s2976_s7 + $0x18] sm:$0xff]   ;;  %v2236_v35 = vld [vmem:[%s2976_s7 + $0x20] sm:$0xff]  }
 0x548   : > { %v1392_v47 = vunpack.c.l.b16 %v1344_v41  ;;  %v2239_v11 = vld [vmem:[%s2976_s7 + $0x38] sm:$0xff]   ;;  %v1651_v12 = vld [vmem:[%s1650_s27] sm:$0xff] }
 0x549   : > { %v1327_v29 = vrot.slane %v1326_v19, 1  ;;  %v1331_v30 = vrot.slane %v1330_v23, 2  ;;  %v1335_v31 = vrot.slane %v1292_v24, 4  ;;  %v1345_v45 = vpack.c.bf16 %v1322_v32, %v1322_v32 }
 0x54a   : > { %v1399_v60 = vsel %vm1032_vm2, %v1392_v47, %v1398_v57 }
 0x54b   : > { %v1328_v33 = vadd.f32 %v1327_v29, %v1326_v19  ;;  %v1332_v36 = vadd.f32 %v1331_v30, %v1330_v23  ;;  %v1336_v37 = vadd.f32 %v1335_v31, %v1292_v24  ;;  %v1393_v48 = vunpack.c.l.b16 %v1345_v45 }
 0x54d   : > { %v1333_v42 = vrot.slane %v1332_v36, 1  ;;  %v1337_v44 = vrot.slane %v1336_v37, 2  ;;  %v1346_v49 = vpack.c.bf16 %v1328_v33, %v1328_v33  ;;  %v1400_v63 = vsel %vm1034_vm3, %v1393_v48, %v1399_v60 }
 0x54f   : > { %v1334_v50 = vadd.f32 %v1333_v42, %v1332_v36  ;;  %v1338_v52 = vadd.f32 %v1337_v44, %v1336_v37  ;;  %v1394_v55 = vunpack.c.l.b16 %v1346_v49  ;;  %v1965_v36 = vld [vmem:[%s2978_s9] ss:$0 sm:$0xff] }
 0x551   : > { %v1347_v21 = vpack.c.bf16 %v1334_v50, %v1334_v50  ;;  %v1339_v22 = vrot.slane %v1338_v52, 1  ;;  %v1401_v3 = vsel %vm1036_vm4, %v1394_v55, %v1400_v63 }
 0x553   : > { %v1340_v27 = vadd.f32 %v1339_v22, %v1338_v52  ;;  %v1395_v58 = vunpack.c.l.b16 %v1347_v21  ;;  %v2284_v52 = vld [vmem:[#allocation2] sm:$0xff] }
 0x554   : > { %v1793_v22 = vld [vmem:[%s1792_s14] sm:$0xff] }
 0x555   : > { %v1348_v34 = vpack.c.bf16 %v1340_v27, %v1340_v27  ;;  %v1402_v39 = vsel %vm1038_vm5, %v1395_v58, %v1401_v3 }
 0x557   : > { %v1396_v4 = vunpack.c.l.b16 %v1348_v34 }
 0x559   : > { %v1403_v0 = vsel %vm1040_vm6, %v1396_v4, %v1402_v39 }
 0x55a   : > { %v1404_v54 = vpack.c.b16 %v1403_v0, %v1403_v0 }
 0x55c   : > { %1599 = vmatmul.mubr.bf16.vlgmr.msra.gmra.mrb[4].mxu0 %v1404_v54  ;;  %1640 = vmatmul.mubr.bf16.vlgmr.msra.gmra.mrb[4].mxu1 %v1404_v54 }
 0x55d   : > { %2048 = vmatpush3.bf16.msra.mxu0 %v2232_v6  ;;  %2063 = vmatprep.mubr.msk.bf16.mxu0 %vm2389_vm8, %v2388_v51 }
 0x55e   : > { %2049 = vmatprep.subr.bf16.mxu0 %v2388_v51 }
 0x561   : > { %2050 = vmatpush3.bf16.msra.mxu0 %v2233_v2 }
 0x562   : > { %2051 = vmatprep.subr.bf16.mxu0 %v2388_v51 }
 0x565   : > { %2052 = vmatpush3.bf16.msra.mxu0 %v2234_v7 }
 0x566   : > { %2053 = vmatprep.subr.bf16.mxu0 %v2388_v51 }
 0x569   : > { %2054 = vmatpush3.bf16.msra.mxu0 %v2235_v8 }
 0x56a   : > { %2055 = vmatprep.subr.bf16.mxu0 %v2388_v51 }
 0x56d   : > { %2056 = vmatpush3.bf16.msra.mxu0 %v2236_v35 }
 0x56e   : > { %2057 = vmatprep.subr.bf16.mxu0 %v2388_v51 }
 0x571   : > { %2058 = vmatpush3.bf16.msra.mxu0 %v2237_v9 }
 0x572   : > { %2059 = vmatprep.subr.bf16.mxu0 %v2388_v51 }
 0x575   : > { %2060 = vmatpush3.bf16.msra.mxu0 %v2238_v10 }
 0x576   : > { %2061 = vmatprep.subr.bf16.mxu0 %v2388_v51 }
 0x579   : > { %2062 = vmatpush3.bf16.msra.mxu0 %v2239_v11 }
 0x58b   : > { %v834_v5 = vpop.f32.mrb[0].mxu1 }
 0x58c   : > { %v836_v56 = vpop.f32.mrb[1].mxu1 }
 0x58d   : > { %v838_v43 = vpop.f32.mrb[2].mxu1  ;;  %v1678_v40 = vadd.f32 %v1965_v36, %v836_v56 }
 0x58e   : > { %v839_v1 = vpop.f32.mrb[3].mxu1 }
 0x62f   : > { %v1600_v14 = vpop.f32.mrb[4].mxu0  ;;  %v1641_v15 = vpop.f32.mrb[4].mxu1 }
 0x630   : > { %v1654_v16 = vadd.f32 %v1651_v12, %v1600_v14  ;;  %v1602_v17 = vpop.f32.mrb[5].mxu0  ;;  %v1643_v18 = vpop.f32.mrb[5].mxu1 }
 0x631   : > { %v1655_v19 = vadd.f32 %v1652_v13, %v1602_v17  ;;  %v1604_v23 = vpop.f32.mrb[6].mxu0  ;;  %v1645_v24 = vpop.f32.mrb[6].mxu1 }
 0x632   : > { %v1657_v25 = vadd.f32 %v1654_v16, %v2610_v61  ;;  %v1605_v26 = vpop.f32.mrb[7].mxu0  ;;  %v1646_v28 = vpop.f32.mrb[7].mxu1  ;;  %v1656_v61 = vadd.f32 %v1653_v38, %v1641_v15 }
 0x633   : > { %v1664_v29 = vadd.f32 %v1655_v19, %v834_v5 }
 0x634   : > { %v1963_v30 = vmul.f32 -1.442695, %v1657_v25 }
 0x635   : > { %v1964_v31 = vmul.f32 -1.442695, %v1664_v29 }
 0x636   : > { %2274 = vpow2.f32 %v1963_v30 }
 0x637   : > { %2276 = vpow2.f32 %v1964_v31 }
 0x640   : > { %v2275_v32 = vpop.eup %2274 }
 0x641   : > { %v1661_v59 = vadd.f32 1.0, %v2275_v32  ;;  %v2277_v33 = vpop.eup %2276 }
 0x642   : > { %v1668_v37 = vadd.f32 1.0, %v2277_v33 }
 0x643   : > { %2278 = vrcp.f32 %v1661_v59 }
 0x644   : > { %2280 = vrcp.f32 %v1668_v37 }
 0x64d   : > { %v2279_v41 = vpop.eup %2278 }
 0x64e   : > { %v1679_v42 = vmul.f32 %v2279_v41, %v1678_v40  ;;  %v2281_v45 = vpop.eup %2280 }
 0x64f   : > { %v1682_v46 = vsub.f32 1.0, %v2281_v45  ;;  %v1684_v62 = vmul.f32 %v2284_v52, %v2281_v45 }
 0x650   : > { %v1680_v44 = vadd.f32 %v1679_v42, %v1656_v61 }
 0x652   : > { %2282 = vtanh.f32 %v1680_v44 }
 0x65c   : > { %v2283_v49 = vpop.eup %2282 }
 0x65d   : > { %v1683_v50 = vmul.f32 %v2283_v49, %v1682_v46 }
 0x65f   : > { %v1685_v20 = vadd.f32 %v1684_v62, %v1683_v50 }
 0x661   : > { %v1686_v47 = vpack.c.bf16 %v1685_v20, %v1685_v20  ;;  %1795 = vst [vmem:[#allocation2] sm:$0xff] %v1685_v20  ;;  %1802 = vst [vmem:[#allocation9] sm:$0xff] (!%p1975_p2), %v1685_v20 }
 0x663   : > { %2064 = vmatmul.mubr.bf16.vlgmr.msra.gmra.mrb[8].mxu0 %v1686_v47 }
 0x735   : > { %1801 = sbr.rel (%p1975_p2) target bundleno = 1852 (0x73c), region = 72 }
 0x736   : > { %v1785_v21 = vpop.f32.mrb[8].mxu0 }
 0x737   : > { %v1786_v48 = vadd.f32 %v1785_v21, %v1643_v18  ;;  %v2065_v53 = vpop.f32.mrb[9].mxu0 }
 0x738   : > { %v1788_v55 = vpop.f32.mrb[10].mxu0 }
 0x739   : > { %v1794_v27 = vadd.f32 %v1793_v22, %v1786_v48  ;;  %v2066_v57 = vpop.f32.mrb[11].mxu0 }
 0x73b   : > { %1797 = vst [vmem:[%s1796_s15] sm:$0xff] %v1794_v27 }
 0x73c PF: > { %p2101_p3 = scmp.eq.s32.totalorder %s2460_s18, 3  ;;  %s2390_s16 = smov [#allocation8]  }
 0x73d   : > { %s1809_s20 = sshll.u32 %s2390_s16, 4  ;;  %s1810_s20 = int_to_ptr.vmem [resolvable:$true] %s1809_s20 }
 0x73e   : > { %s2313_s19 = scalar_lea.vmem %s1810_s20, 512  ;;  %p2320_p12 = scmp.lt.s32.totalorder %s1810_s20, %s1810_s20 }
 0x73f   : > { %p2314_p4 = scmp.ne.s32.totalorder %s1810_s20, %s2313_s19  ;;  %p2321_p13 = scmp.lt.s32.totalorder %s2313_s19, %s2313_s19 }
 0x741   : > { %p2315_p6 = pnand %p2314_p4, %p2101_p3  ;;  %p2322_p0 = por %p2321_p13, %p2320_p12 }
 0x743   : > { %p2316_p11 = pneg %p2315_p6 }
 0x745   : > { %p2323_p1 = pnand %p2322_p0, %p2316_p11 }
 0x747   : > { %2326 = shalt.err (!%p2323_p1)
}
 0x748   : > { %s2327_s23 = scalar_lea.hbm %s2979_s10, 512 }
 0x749   : > { %p2328_p5 = scmp.ne.s32.totalorder %s2979_s10, %s2327_s23  ;;  %p2333_p8 = scmp.lt.u32.totalorder %s2327_s23, %s2979_s10 }
 0x74b   : > { %p2329_p7 = pnand %p2328_p5, %p2101_p3 }
 0x74d   : > { %p2330_p9 = pneg %p2329_p7 }
 0x74f   : > { %p2335_p10 = pnand %p2333_p8, %p2330_p9 }
 0x751   : > { %2338 = shalt.err (!%p2335_p10)
}
 0x752   : > { %s2391_s28 = smov 128   ;;  %s2392_s29 = smov 8  }
 0x753   : > { %2088 = dma.vmem_to_hbm [thread:$0]  (%p2101_p3), %s1810_s20, 512, %s2979_s10, [#allocation7], %s2391_s28, %s2391_s28, %s2392_s29  }
 0x754   : > { %s2393_s13 = smov [#allocation9]  }
 0x755   : > { %s1823_s14 = sshll.u32 %s2393_s13, 4  ;;  %s1824_s14 = int_to_ptr.vmem [resolvable:$true] %s1823_s14 }
 0x756   : > { %s2339_s15 = scalar_lea.vmem %s1824_s14, 128  ;;  %p2346_p11 = scmp.lt.s32.totalorder %s1824_s14, %s1824_s14 }
 0x757   : > { %p2340_p2 = scmp.ne.s32.totalorder %s1824_s14, %s2339_s15  ;;  %p2347_p12 = scmp.lt.s32.totalorder %s2339_s15, %s2339_s15 }
 0x759   : > { %p2341_p4 = pnand %p2340_p2, %p2101_p3  ;;  %p2348_p13 = por %p2347_p12, %p2346_p11 }
 0x75b   : > { %p2342_p6 = pneg %p2341_p4 }
 0x75d   : > { %p2349_p0 = pnand %p2348_p13, %p2342_p6 }
 0x75f   : > { %2352 = shalt.err (!%p2349_p0)
}
 0x760   : > { %s2353_s21 = scalar_lea.hbm %s2980_s11, 128 }
 0x761   : > { %p2354_p1 = scmp.ne.s32.totalorder %s2980_s11, %s2353_s21  ;;  %p2359_p9 = scmp.lt.u32.totalorder %s2353_s21, %s2980_s11 }
 0x763   : > { %p2355_p5 = pnand %p2354_p1, %p2101_p3 }
 0x765   : > { %p2356_p7 = pneg %p2355_p5 }
 0x767   : > { %p2361_p8 = pnand %p2359_p9, %p2356_p7 }
 0x769   : > { %2364 = shalt.err (!%p2361_p8)
}
 0x76a   : > { %2090 = dma.vmem_to_hbm [thread:$0]  (%p2101_p3), %s1824_s14, 128, %s2980_s11, [#allocation10]  }
 0x76b   : > { %2374 = dma.done.wait (%p2101_p3), [#allocation7], 512  }
 0x76c   : > { %2376 = vsyncadd (%p2101_p3), [#allocation7], 4294966784 }
 0x76d   : > { %2378 = dma.done.wait (%p2101_p3), [#allocation10], 128  }
 0x76e   : > { %2380 = vsyncadd (%p2101_p3), [#allocation10], 4294967168 }
 0x76f PF: > { %s25_s17 = sadd.s32 1, %s2383_s17  }
 0x770   : > { %p22_p10 = scmp.ge.s32.totalorder %s25_s17, 6  }
 0x772   :  { %24 = sbr.rel (!%p22_p10) target bundleno = 3 (0x3), region = 108 }
 0x779   :  { %1840 = vsyncpa [#allocation6], 1 }
 0x77a   :  { %1842 = vsyncpa [#allocation6 + $0x1], 1 }
 0x77b   :  { %1843 = vsyncpa [#allocation7], 1 }
 0x77c   :  { %1845 = vsyncpa [#allocation7 + $0x1], 1 }
 0x77d   :  { %1846 = vsyncpa [#allocation10], 1 }

</bundles_post_ra>
